<compile_context>
chip_gen: v7x
topology: tpu7x:2x2x1
jax: 0.10.0
libtpu: 0.0.40
codegen_flags: <defaults>
</compile_context>

<pallas_src>
import functools

import jax
import jax.numpy as jnp
import numpy as np
from jax.experimental import pallas as pl
from jax.experimental.pallas import tpu as pltpu


# Row layout of the packed f32 parameter slab (built in the wrapper).
_P_G1, _P_BE1 = 0, 1        # BN1 gamma / beta (first 64 lanes valid)
_P_G2, _P_BE2 = 2, 3        # BN2 gamma / beta
_P_G3, _P_BE3 = 4, 5        # BN3 gamma / beta
_P_BL = 6                   # Linear bias (first 2 lanes valid, rest zero)
_P_WL = 8                   # Linear weight rows [8:136), (128, 128) zero-padded
_P_ROWS = _P_WL + 128       # 136


# ----------------------------- in-kernel helpers -----------------------------

def _batchnorm(h2, gamma, beta):
    """Training-mode BatchNorm1d with eps = 0 (BatchNorm1d(C, False)).

    h2: (N*L, C).  Two-pass mean/variance (avoids E[x^2]-E[x]^2 cancellation),
    biased variance, batch statistics.  eps = 0 is the module's semantics; a
    zero-variance channel would yield inf.
    """
    inv_m = 1.0 / float(h2.shape[0])
    mu = h2.sum(axis=0, keepdims=True) * inv_m
    d = h2 - mu
    var = (d * d).sum(axis=0, keepdims=True) * inv_m
    return d * jax.lax.rsqrt(var) * gamma + beta


def _prelu(h, a):
    return jnp.where(h > 0, h, a * h)


def _maxpool4(h3):
    """MaxPool1d(4, 4) along time (floor truncation): (N, L, C) -> (N, L//4, C)."""
    N, L, C = h3.shape
    Lout = L // 4
    hw = h3[:, :4 * Lout, :].reshape(N * Lout, 4, C)
    return jnp.max(hw, axis=1).reshape(N, Lout, C)


def _conv_k7(pad_ref, h3, w2d):
    """Conv1d(k=7, pad=3) via a padded VMEM scratch + one im2col MXU matmul.

    pad_ref: (N, L+6, Cin) bf16 scratch. Zeroed once (halo), activations are
             written into rows [3:L+3], the 7 taps are aligned slices of it.
    h3:      (N, L, Cin) f32 activations of the previous layer.
    w2d:     (7*Cin, Cout) bf16 weight slice (taps folded into contraction).
    Returns (y, L) with y = (N*L, Cout) float32 (no conv bias; BN cancels it).
    """
    N, Lp, Cin = pad_ref.shape
    L = Lp - 6
    pad_ref[...] = jnp.zeros_like(pad_ref)                 # zero the 3-row halos
    pad_ref[:, 3:3 + L, :] = h3.astype(pad_ref.dtype)      # body rows, bf16 once
    col = jnp.concatenate([pad_ref[:, k:k + L, :] for k in range(7)], axis=-1)
    col = col.reshape(N * L, 7 * Cin)
    return jnp.dot(col, w2d, preferred_element_type=jnp.float32), L


# --------------------------------- the kernel --------------------------------

def _eegnet_kernel(col1_ref, wslab_ref, pslab_ref, a_ref, out_ref,
                   pad2_ref, pad3_ref, *,
                   w1_rows, w2_off, w2_rows, w3_off, w3_rows):
    a = a_ref[0]                               # shared PReLU scalar (SMEM)
    N = pad2_ref.shape[0]
    C1 = pad2_ref.shape[2]                     # 64
    C2 = pad3_ref.shape[2]                     # 128
    L1 = pad2_ref.shape[1] - 6

    # conv1 (im2col columns built wrapper-side) -> BN1 -> PReLU.
    # Conv biases are dropped everywhere: BN's batch-mean subtraction cancels
    # any per-channel constant exactly (verified against the biased reference).
    h = jnp.dot(col1_ref[...], wslab_ref[0:w1_rows, 0:C1],
                preferred_element_type=jnp.float32)                  # (N*L1, 64)
    h = _prelu(_batchnorm(h, pslab_ref[_P_G1:_P_G1 + 1, 0:C1],
                          pslab_ref[_P_BE1:_P_BE1 + 1, 0:C1]), a)

    # conv2 -> BN2 -> PReLU -> MaxPool1d(4, 4)
    h, L2 = _conv_k7(pad2_ref, h.reshape(N, L1, C1),
                     wslab_ref[w2_off:w2_off + w2_rows, :])           # (N*L2, 128)
    h = _prelu(_batchnorm(h, pslab_ref[_P_G2:_P_G2 + 1, :],
                          pslab_ref[_P_BE2:_P_BE2 + 1, :]), a)
    h3 = _maxpool4(h.reshape(N, L2, C2))

    # conv3 -> BN3 -> PReLU -> MaxPool1d(4, 4)
    h, L3 = _conv_k7(pad3_ref, h3, wslab_ref[w3_off:w3_off + w3_rows, :])
    h = _prelu(_batchnorm(h, pslab_ref[_P_G3:_P_G3 + 1, :],
                          pslab_ref[_P_BE3:_P_BE3 + 1, :]), a)
    h3 = _maxpool4(h.reshape(N, L3, C2))

    # mean over time -> Linear(128, 2); lane-dense (weight zero-padded to 128).
    feat = jnp.mean(h3, axis=1)                                       # (N, 128)
    out_ref[...] = (jnp.dot(feat, pslab_ref[_P_WL:_P_WL + 128, :],
                            preferred_element_type=jnp.float32)
                    + pslab_ref[_P_BL:_P_BL + 1, :])


# --------------------------------- wrapper -----------------------------------

def _round_up(x, m):
    return (x + m - 1) // m * m


def eegnet_forward_pallas(x_ncl, p):
    N, Cin, L = x_ncl.shape
    K1, pad1 = 3, 3
    L1 = L + 2 * pad1 - K1 + 1       # conv1 output length
    L2 = L1                          # conv2: k=7, pad=3 -> same length
    Lp2 = L2 // 4                    # after MaxPool1d(4, 4)

    # conv1 im2col built wrapper-side (pure layout plumbing; Cin is tiny).
    x = jnp.transpose(x_ncl, (0, 2, 1)).astype(jnp.float32)          # (N, L, Cin)
    xp = jnp.pad(x, ((0, 0), (pad1, pad1), (0, 0)))
    col1 = jnp.concatenate([xp[:, k:k + L1, :] for k in range(K1)], axis=-1)
    col1 = col1.reshape(N * L1, K1 * Cin).astype(jnp.bfloat16)       # (N*L1, 12)

    # One bf16 weight slab: w1 | w2 | w3 at 16-row-aligned offsets (1 DMA).
    def wconv(w):                     # (Cout, Cin, K) -> (K*Cin, Cout)
        Cout, Ci, K = w.shape
        return jnp.transpose(w, (2, 1, 0)).reshape(K * Ci, Cout)

    w1, w2, w3 = wconv(p['w1']), wconv(p['w2']), wconv(p['w3'])
    w1_rows = w1.shape[0]
    w2_off = _round_up(w1_rows, 16)
    w2_rows = w2.shape[0]
    w3_off = w2_off + _round_up(w2_rows, 16)
    w3_rows = w3.shape[0]
    wslab = jnp.zeros((w3_off + _round_up(w3_rows, 16), 128), jnp.float32)
    wslab = wslab.at[0:w1_rows, 0:w1.shape[1]].set(w1)
    wslab = wslab.at[w2_off:w2_off + w2_rows, :].set(w2)
    wslab = wslab.at[w3_off:w3_off + w3_rows, :].set(w3)
    wslab = wslab.astype(jnp.bfloat16)

    # One f32 parameter slab: BN affine params + Linear weight/bias (1 DMA).
    pslab = jnp.zeros((_P_ROWS, 128), jnp.float32)
    pslab = pslab.at[_P_G1, 0:64].set(p['g1'])
    pslab = pslab.at[_P_BE1, 0:64].set(p['be1'])
    pslab = pslab.at[_P_G2, :].set(p['g2'])
    pslab = pslab.at[_P_BE2, :].set(p['be2'])
    pslab = pslab.at[_P_G3, :].set(p['g3'])
    pslab = pslab.at[_P_BE3, :].set(p['be3'])
    pslab = pslab.at[_P_BL, 0:2].set(p['bl'])
    pslab = pslab.at[_P_WL:_P_WL + 128, 0:2].set(jnp.transpose(p['wl'], (1, 0)))

    prelu_a = jnp.full((1,), p['prelu_a'], jnp.float32)              # -> SMEM

    vmem = pl.BlockSpec(memory_space=pltpu.MemorySpace.VMEM)
    smem = pl.BlockSpec(memory_space=pltpu.MemorySpace.SMEM)

    kernel = functools.partial(
        _eegnet_kernel, w1_rows=w1_rows, w2_off=w2_off, w2_rows=w2_rows,
        w3_off=w3_off, w3_rows=w3_rows)

    # No grid: everything fits VMEM comfortably at this size.  If N scales up,
    # add a batch grid (dimension_semantics=("parallel",...)) with a two-pass
    # BatchNorm so v7x's second TensorCore is used and VMEM stays bounded.
    out = pl.pallas_call(
        kernel,
        out_shape=jax.ShapeDtypeStruct((N, 128), jnp.float32),
        in_specs=[vmem, vmem, vmem, smem],
        out_specs=vmem,
        scratch_shapes=[pltpu.VMEM((N, L1 + 6, 64), jnp.bfloat16),   # conv2 pad
                        pltpu.VMEM((N, Lp2 + 6, 128), jnp.bfloat16)],  # conv3 pad
        compiler_params=pltpu.CompilerParams(
            vmem_limit_bytes=32 * 1024 * 1024),   # explicit, safe on v5e/v6e/v7x
    )(col1, wslab, pslab, prelu_a)

    # Kernel stores a lane-dense (N, 128) tile; the 2 real logit lanes are here.
    return out[:, :2]


# ------------------------- pure-JAX reference (check) -------------------------

def eegnet_forward_ref(x, p):
    """Faithful f32 reference, including the conv biases the kernel drops."""
    def conv1d(x, w, b, pad):
        y = jax.lax.conv_general_dilated(
            x, w, window_strides=(1,), padding=[(pad, pad)],
            dimension_numbers=('NCH', 'OIH', 'NCH'))
        return y + b[None, :, None]

    def bn(x, g, be):
        mu = x.mean(axis=(0, 2), keepdims=True)
        var = ((x - mu) ** 2).mean(axis=(0, 2), keepdims=True)
        return (x - mu) / jnp.sqrt(var) * g[None, :, None] + be[None, :, None]

    def prelu(x, a):
        return jnp.where(x > 0, x, a * x)

    def pool4(x):
        N, C, L = x.shape
        Lo = L // 4
        return x[:, :, :4 * Lo].reshape(N, C, Lo, 4).max(-1)

    a = p['prelu_a']
    h = prelu(bn(conv1d(x, p['w1'], p['b1'], 3), p['g1'], p['be1']), a)
    h = pool4(prelu(bn(conv1d(h, p['w2'], p['b2'], 3), p['g2'], p['be2']), a))
    h = pool4(prelu(bn(conv1d(h, p['w3'], p['b3'], 3), p['g3'], p['be3']), a))
    m = h.mean(-1)
    return m @ p['wl'].T + p['bl'][None, :]


# ----------------------------------- main -------------------------------------

if __name__ == "__main__":
    key = jax.random.PRNGKey(0)
    N, Cin, L = 2, 4, 16                      # small channels_num=4, seq=16
    ks = jax.random.split(key, 16)

    p = {
        'w1': 0.2 * jax.random.normal(ks[0], (64, Cin, 3), jnp.float32),
        'b1': 0.1 * jax.random.normal(ks[1], (64,), jnp.float32),
        'g1': 1.0 + 0.1 * jax.random.normal(ks[2], (64,), jnp.float32),
        'be1': 0.1 * jax.random.normal(ks[3], (64,), jnp.float32),
        'w2': 0.1 * jax.random.normal(ks[4], (128, 64, 7), jnp.float32),
        'b2': 0.1 * jax.random.normal(ks[5], (128,), jnp.float32),
        'g2': 1.0 + 0.1 * jax.random.normal(ks[6], (128,), jnp.float32),
        'be2': 0.1 * jax.random.normal(ks[7], (128,), jnp.float32),
        'w3': 0.1 * jax.random.normal(ks[8], (128, 128, 7), jnp.float32),
        'b3': 0.1 * jax.random.normal(ks[9], (128,), jnp.float32),
        'g3': 1.0 + 0.1 * jax.random.normal(ks[10], (128,), jnp.float32),
        'be3': 0.1 * jax.random.normal(ks[11], (128,), jnp.float32),
        'prelu_a': 0.25,                                          # nn.PReLU() init
        'wl': 0.1 * jax.random.normal(ks[12], (2, 128), jnp.float32),
        'bl': 0.1 * jax.random.normal(ks[13], (2,), jnp.float32),
    }
    x = jax.random.normal(ks[14], (N, Cin, L), jnp.float32)       # PyTorch NCL

    out = jax.block_until_ready(eegnet_forward_pallas(x, p))
    ref = eegnet_forward_ref(x, p)

    assert out.shape == (N, 2)
    # Tolerance 3e-2: all three convs use bf16 MXU operands (f32 accumulation,
    # native path on v6e/v7x); the reference is pure f32 and keeps the conv
    # biases the kernel drops (they cancel exactly under training-mode BN).
    np.testing.assert_allclose(np.asarray(out), np.asarray(ref),
                               rtol=3e-2, atol=3e-2)
    print("KERNEL_OK")
</pallas_src>

<mosaic_0001>
module attributes {stable_mosaic.version = 11 : i64} {
  func.func @_eegnet_kernel(%arg0: memref<40x12xbf16, #tpu.memory_space<vmem>>, %arg1: memref<1360x128xbf16, #tpu.memory_space<vmem>>, %arg2: memref<136x128xf32, #tpu.memory_space<vmem>>, %arg3: memref<1xf32, #tpu.memory_space<smem>>, %arg4: memref<2x128xf32, #tpu.memory_space<vmem>>, %arg5: memref<2x26x64xbf16, #tpu.memory_space<vmem>>, %arg6: memref<2x11x128xbf16, #tpu.memory_space<vmem>>) attributes {dimension_semantics = [], scalar_prefetch = 0 : i64, scratch_operands = 2 : i64, tpu.core_type = #tpu.core_type<tc>} {
    %c0 = arith.constant 0 : index
    %0 = memref.load %arg3[%c0] : memref<1xf32, #tpu.memory_space<smem>>
    %c0_0 = arith.constant 0 : index
    %c0_1 = arith.constant 0 : index
    %1 = vector.load %arg0[%c0_0, %c0_1] : memref<40x12xbf16, #tpu.memory_space<vmem>>, vector<40x12xbf16>
    %c0_2 = arith.constant 0 : index
    %c0_3 = arith.constant 0 : index
    %2 = vector.load %arg1[%c0_2, %c0_3] : memref<1360x128xbf16, #tpu.memory_space<vmem>>, vector<12x64xbf16>
    %cst = arith.constant dense<0.000000e+00> : vector<40x64xf32>
    %3 = tpu.matmul %1, %2, %cst {dimension_numbers = #tpu.dot_dimension_numbers<[1], [0], [0], [1], [0, 0, 1, 1], [], []>} : vector<40x12xbf16>, vector<12x64xbf16>, vector<40x64xf32> -> vector<40x64xf32>
    %c0_4 = arith.constant 0 : index
    %c0_5 = arith.constant 0 : index
    %4 = vector.load %arg2[%c0_4, %c0_5] : memref<136x128xf32, #tpu.memory_space<vmem>>, vector<1x64xf32>
    %c1 = arith.constant 1 : index
    %c0_6 = arith.constant 0 : index
    %5 = vector.load %arg2[%c1, %c0_6] : memref<136x128xf32, #tpu.memory_space<vmem>>, vector<1x64xf32>
    %cst_7 = arith.constant dense<0.000000e+00> : vector<64xf32>
    %6 = vector.multi_reduction <add>, %3, %cst_7 [0] : vector<40x64xf32> to vector<64xf32>
    %7 = vector.shape_cast %6 : vector<64xf32> to vector<1x64xf32>
    %cst_8 = arith.constant 2.500000e-02 : f32
    %8 = vector.broadcast %cst_8 : f32 to vector<1x64xf32>
    %9 = arith.mulf %7, %8 : vector<1x64xf32>
    %10 = vector.broadcast %9 : vector<1x64xf32> to vector<40x64xf32>
    %11 = arith.subf %3, %10 : vector<40x64xf32>
    %12 = arith.mulf %11, %11 : vector<40x64xf32>
    %cst_9 = arith.constant dense<0.000000e+00> : vector<64xf32>
    %13 = vector.multi_reduction <add>, %12, %cst_9 [0] : vector<40x64xf32> to vector<64xf32>
    %14 = vector.shape_cast %13 : vector<64xf32> to vector<1x64xf32>
    %cst_10 = arith.constant 2.500000e-02 : f32
    %15 = vector.broadcast %cst_10 : f32 to vector<1x64xf32>
    %16 = arith.mulf %14, %15 : vector<1x64xf32>
    %17 = math.rsqrt %16 : vector<1x64xf32>
    %18 = vector.broadcast %17 : vector<1x64xf32> to vector<40x64xf32>
    %19 = arith.mulf %11, %18 : vector<40x64xf32>
    %20 = vector.broadcast %4 : vector<1x64xf32> to vector<40x64xf32>
    %21 = arith.mulf %19, %20 : vector<40x64xf32>
    %22 = vector.broadcast %5 : vector<1x64xf32> to vector<40x64xf32>
    %23 = arith.addf %21, %22 : vector<40x64xf32>
    %cst_11 = arith.constant 0.000000e+00 : f32
    %24 = vector.broadcast %cst_11 : f32 to vector<40x64xf32>
    %25 = arith.cmpf ogt, %23, %24 : vector<40x64xf32>
    %26 = vector.broadcast %0 : f32 to vector<40x64xf32>
    %27 = arith.mulf %26, %23 : vector<40x64xf32>
    %28 = arith.select %25, %23, %27 : vector<40x64xi1>, vector<40x64xf32>
    %29 = vector.shape_cast %28 : vector<40x64xf32> to vector<2x20x64xf32>
    %c16 = arith.constant 16 : index
    %c0_12 = arith.constant 0 : index
    %30 = vector.load %arg1[%c16, %c0_12] : memref<1360x128xbf16, #tpu.memory_space<vmem>>, vector<448x128xbf16>
    %cst_13 = arith.constant 0.000000e+00 : bf16
    %31 = vector.broadcast %cst_13 : bf16 to vector<2x26x64xbf16>
    %c0_14 = arith.constant 0 : index
    %c0_15 = arith.constant 0 : index
    %c0_16 = arith.constant 0 : index
    %32 = vector.load %arg5[%c0_14, %c0_15, %c0_16] : memref<2x26x64xbf16, #tpu.memory_space<vmem>>, vector<2x26x64xbf16>
    tpu.vector_store %arg5[%c0_14, %c0_15, %c0_16], %31 {strides = array<i32>} : memref<2x26x64xbf16, #tpu.memory_space<vmem>>, vector<2x26x64xbf16>,
    %33 = arith.truncf %29 : vector<2x20x64xf32> to vector<2x20x64xbf16>
    %c0_17 = arith.constant 0 : index
    %c3 = arith.constant 3 : index
    %c0_18 = arith.constant 0 : index
    %34 = vector.load %arg5[%c0_17, %c3, %c0_18] : memref<2x26x64xbf16, #tpu.memory_space<vmem>>, vector<2x20x64xbf16>
    tpu.vector_store %arg5[%c0_17, %c3, %c0_18], %33 {strides = array<i32>} : memref<2x26x64xbf16, #tpu.memory_space<vmem>>, vector<2x20x64xbf16>,
    %c0_19 = arith.constant 0 : index
    %c0_20 = arith.constant 0 : index
    %c0_21 = arith.constant 0 : index
    %35 = vector.load %arg5[%c0_19, %c0_20, %c0_21] : memref<2x26x64xbf16, #tpu.memory_space<vmem>>, vector<2x20x64xbf16>
    %c0_22 = arith.constant 0 : index
    %c1_23 = arith.constant 1 : index
    %c0_24 = arith.constant 0 : index
    %36 = vector.load %arg5[%c0_22, %c1_23, %c0_24] : memref<2x26x64xbf16, #tpu.memory_space<vmem>>, vector<2x20x64xbf16>
    %c0_25 = arith.constant 0 : index
    %c2 = arith.constant 2 : index
    %c0_26 = arith.constant 0 : index
    %37 = vector.load %arg5[%c0_25, %c2, %c0_26] : memref<2x26x64xbf16, #tpu.memory_space<vmem>>, vector<2x20x64xbf16>
    %c0_27 = arith.constant 0 : index
    %c3_28 = arith.constant 3 : index
    %c0_29 = arith.constant 0 : index
    %38 = vector.load %arg5[%c0_27, %c3_28, %c0_29] : memref<2x26x64xbf16, #tpu.memory_space<vmem>>, vector<2x20x64xbf16>
    %c0_30 = arith.constant 0 : index
    %c4 = arith.constant 4 : index
    %c0_31 = arith.constant 0 : index
    %39 = vector.load %arg5[%c0_30, %c4, %c0_31] : memref<2x26x64xbf16, #tpu.memory_space<vmem>>, vector<2x20x64xbf16>
    %c0_32 = arith.constant 0 : index
    %c5 = arith.constant 5 : index
    %c0_33 = arith.constant 0 : index
    %40 = vector.load %arg5[%c0_32, %c5, %c0_33] : memref<2x26x64xbf16, #tpu.memory_space<vmem>>, vector<2x20x64xbf16>
    %c0_34 = arith.constant 0 : index
    %c6 = arith.constant 6 : index
    %c0_35 = arith.constant 0 : index
    %41 = vector.load %arg5[%c0_34, %c6, %c0_35] : memref<2x26x64xbf16, #tpu.memory_space<vmem>>, vector<2x20x64xbf16>
    %42 = tpu.concatenate %35, %36, %37, %38, %39, %40, %41 in 2 : vector<2x20x64xbf16>, vector<2x20x64xbf16>, vector<2x20x64xbf16>, vector<2x20x64xbf16>, vector<2x20x64xbf16>, vector<2x20x64xbf16>, vector<2x20x64xbf16> -> vector<2x20x448xbf16>
    %43 = vector.shape_cast %42 : vector<2x20x448xbf16> to vector<40x448xbf16>
    %cst_36 = arith.constant dense<0.000000e+00> : vector<40x128xf32>
    %44 = tpu.matmul %43, %30, %cst_36 {dimension_numbers = #tpu.dot_dimension_numbers<[1], [0], [0], [1], [0, 0, 1, 1], [], []>} : vector<40x448xbf16>, vector<448x128xbf16>, vector<40x128xf32> -> vector<40x128xf32>
    %c2_37 = arith.constant 2 : index
    %c0_38 = arith.constant 0 : index
    %45 = vector.load %arg2[%c2_37, %c0_38] : memref<136x128xf32, #tpu.memory_space<vmem>>, vector<1x128xf32>
    %c3_39 = arith.constant 3 : index
    %c0_40 = arith.constant 0 : index
    %46 = vector.load %arg2[%c3_39, %c0_40] : memref<136x128xf32, #tpu.memory_space<vmem>>, vector<1x128xf32>
    %cst_41 = arith.constant dense<0.000000e+00> : vector<128xf32>
    %47 = vector.multi_reduction <add>, %44, %cst_41 [0] : vector<40x128xf32> to vector<128xf32>
    %48 = vector.shape_cast %47 : vector<128xf32> to vector<1x128xf32>
    %cst_42 = arith.constant 2.500000e-02 : f32
    %49 = vector.broadcast %cst_42 : f32 to vector<1x128xf32>
    %50 = arith.mulf %48, %49 : vector<1x128xf32>
    %51 = vector.broadcast %50 : vector<1x128xf32> to vector<40x128xf32>
    %52 = arith.subf %44, %51 : vector<40x128xf32>
    %53 = arith.mulf %52, %52 : vector<40x128xf32>
    %cst_43 = arith.constant dense<0.000000e+00> : vector<128xf32>
    %54 = vector.multi_reduction <add>, %53, %cst_43 [0] : vector<40x128xf32> to vector<128xf32>
    %55 = vector.shape_cast %54 : vector<128xf32> to vector<1x128xf32>
    %cst_44 = arith.constant 2.500000e-02 : f32
    %56 = vector.broadcast %cst_44 : f32 to vector<1x128xf32>
    %57 = arith.mulf %55, %56 : vector<1x128xf32>
    %58 = math.rsqrt %57 : vector<1x128xf32>
    %59 = vector.broadcast %58 : vector<1x128xf32> to vector<40x128xf32>
    %60 = arith.mulf %52, %59 : vector<40x128xf32>
    %61 = vector.broadcast %45 : vector<1x128xf32> to vector<40x128xf32>
    %62 = arith.mulf %60, %61 : vector<40x128xf32>
    %63 = vector.broadcast %46 : vector<1x128xf32> to vector<40x128xf32>
    %64 = arith.addf %62, %63 : vector<40x128xf32>
    %cst_45 = arith.constant 0.000000e+00 : f32
    %65 = vector.broadcast %cst_45 : f32 to vector<40x128xf32>
    %66 = arith.cmpf ogt, %64, %65 : vector<40x128xf32>
    %67 = vector.broadcast %0 : f32 to vector<40x128xf32>
    %68 = arith.mulf %67, %64 : vector<40x128xf32>
    %69 = arith.select %66, %64, %68 : vector<40x128xi1>, vector<40x128xf32>
    %70 = vector.shape_cast %69 : vector<40x128xf32> to vector<2x20x128xf32>
    %71 = vector.shape_cast %70 : vector<2x20x128xf32> to vector<10x4x128xf32>
    %cst_46 = arith.constant dense<0xFF800000> : vector<10x128xf32>
    %72 = vector.multi_reduction <maximumf>, %71, %cst_46 [1] : vector<10x4x128xf32> to vector<10x128xf32>
    %73 = vector.shape_cast %72 : vector<10x128xf32> to vector<2x5x128xf32>
    %c464 = arith.constant 464 : index
    %c0_47 = arith.constant 0 : index
    %74 = vector.load %arg1[%c464, %c0_47] : memref<1360x128xbf16, #tpu.memory_space<vmem>>, vector<896x128xbf16>
    %cst_48 = arith.constant 0.000000e+00 : bf16
    %75 = vector.broadcast %cst_48 : bf16 to vector<2x11x128xbf16>
    %c0_49 = arith.constant 0 : index
    %c0_50 = arith.constant 0 : index
    %c0_51 = arith.constant 0 : index
    %76 = vector.load %arg6[%c0_49, %c0_50, %c0_51] : memref<2x11x128xbf16, #tpu.memory_space<vmem>>, vector<2x11x128xbf16>
    tpu.vector_store %arg6[%c0_49, %c0_50, %c0_51], %75 {strides = array<i32>} : memref<2x11x128xbf16, #tpu.memory_space<vmem>>, vector<2x11x128xbf16>,
    %77 = arith.truncf %73 : vector<2x5x128xf32> to vector<2x5x128xbf16>
    %c0_52 = arith.constant 0 : index
    %c3_53 = arith.constant 3 : index
    %c0_54 = arith.constant 0 : index
    %78 = vector.load %arg6[%c0_52, %c3_53, %c0_54] : memref<2x11x128xbf16, #tpu.memory_space<vmem>>, vector<2x5x128xbf16>
    tpu.vector_store %arg6[%c0_52, %c3_53, %c0_54], %77 {strides = array<i32>} : memref<2x11x128xbf16, #tpu.memory_space<vmem>>, vector<2x5x128xbf16>,
    %c0_55 = arith.constant 0 : index
    %c0_56 = arith.constant 0 : index
    %c0_57 = arith.constant 0 : index
    %79 = vector.load %arg6[%c0_55, %c0_56, %c0_57] : memref<2x11x128xbf16, #tpu.memory_space<vmem>>, vector<2x5x128xbf16>
    %c0_58 = arith.constant 0 : index
    %c1_59 = arith.constant 1 : index
    %c0_60 = arith.constant 0 : index
    %80 = vector.load %arg6[%c0_58, %c1_59, %c0_60] : memref<2x11x128xbf16, #tpu.memory_space<vmem>>, vector<2x5x128xbf16>
    %c0_61 = arith.constant 0 : index
    %c2_62 = arith.constant 2 : index
    %c0_63 = arith.constant 0 : index
    %81 = vector.load %arg6[%c0_61, %c2_62, %c0_63] : memref<2x11x128xbf16, #tpu.memory_space<vmem>>, vector<2x5x128xbf16>
    %c0_64 = arith.constant 0 : index
    %c3_65 = arith.constant 3 : index
    %c0_66 = arith.constant 0 : index
    %82 = vector.load %arg6[%c0_64, %c3_65, %c0_66] : memref<2x11x128xbf16, #tpu.memory_space<vmem>>, vector<2x5x128xbf16>
    %c0_67 = arith.constant 0 : index
    %c4_68 = arith.constant 4 : index
    %c0_69 = arith.constant 0 : index
    %83 = vector.load %arg6[%c0_67, %c4_68, %c0_69] : memref<2x11x128xbf16, #tpu.memory_space<vmem>>, vector<2x5x128xbf16>
    %c0_70 = arith.constant 0 : index
    %c5_71 = arith.constant 5 : index
    %c0_72 = arith.constant 0 : index
    %84 = vector.load %arg6[%c0_70, %c5_71, %c0_72] : memref<2x11x128xbf16, #tpu.memory_space<vmem>>, vector<2x5x128xbf16>
    %c0_73 = arith.constant 0 : index
    %c6_74 = arith.constant 6 : index
    %c0_75 = arith.constant 0 : index
    %85 = vector.load %arg6[%c0_73, %c6_74, %c0_75] : memref<2x11x128xbf16, #tpu.memory_space<vmem>>, vector<2x5x128xbf16>
    %86 = tpu.concatenate %79, %80, %81, %82, %83, %84, %85 in 2 : vector<2x5x128xbf16>, vector<2x5x128xbf16>, vector<2x5x128xbf16>, vector<2x5x128xbf16>, vector<2x5x128xbf16>, vector<2x5x128xbf16>, vector<2x5x128xbf16> -> vector<2x5x896xbf16>
    %87 = vector.shape_cast %86 : vector<2x5x896xbf16> to vector<10x896xbf16>
    %cst_76 = arith.constant dense<0.000000e+00> : vector<10x128xf32>
    %88 = tpu.matmul %87, %74, %cst_76 {dimension_numbers = #tpu.dot_dimension_numbers<[1], [0], [0], [1], [0, 0, 1, 1], [], []>} : vector<10x896xbf16>, vector<896x128xbf16>, vector<10x128xf32> -> vector<10x128xf32>
    %c4_77 = arith.constant 4 : index
    %c0_78 = arith.constant 0 : index
    %89 = vector.load %arg2[%c4_77, %c0_78] : memref<136x128xf32, #tpu.memory_space<vmem>>, vector<1x128xf32>
    %c5_79 = arith.constant 5 : index
    %c0_80 = arith.constant 0 : index
    %90 = vector.load %arg2[%c5_79, %c0_80] : memref<136x128xf32, #tpu.memory_space<vmem>>, vector<1x128xf32>
    %cst_81 = arith.constant dense<0.000000e+00> : vector<128xf32>
    %91 = vector.multi_reduction <add>, %88, %cst_81 [0] : vector<10x128xf32> to vector<128xf32>
    %92 = vector.shape_cast %91 : vector<128xf32> to vector<1x128xf32>
    %cst_82 = arith.constant 1.000000e-01 : f32
    %93 = vector.broadcast %cst_82 : f32 to vector<1x128xf32>
    %94 = arith.mulf %92, %93 : vector<1x128xf32>
    %95 = vector.broadcast %94 : vector<1x128xf32> to vector<10x128xf32>
    %96 = arith.subf %88, %95 : vector<10x128xf32>
    %97 = arith.mulf %96, %96 : vector<10x128xf32>
    %cst_83 = arith.constant dense<0.000000e+00> : vector<128xf32>
    %98 = vector.multi_reduction <add>, %97, %cst_83 [0] : vector<10x128xf32> to vector<128xf32>
    %99 = vector.shape_cast %98 : vector<128xf32> to vector<1x128xf32>
    %cst_84 = arith.constant 1.000000e-01 : f32
    %100 = vector.broadcast %cst_84 : f32 to vector<1x128xf32>
    %101 = arith.mulf %99, %100 : vector<1x128xf32>
    %102 = math.rsqrt %101 : vector<1x128xf32>
    %103 = vector.broadcast %102 : vector<1x128xf32> to vector<10x128xf32>
    %104 = arith.mulf %96, %103 : vector<10x128xf32>
    %105 = vector.broadcast %89 : vector<1x128xf32> to vector<10x128xf32>
    %106 = arith.mulf %104, %105 : vector<10x128xf32>
    %107 = vector.broadcast %90 : vector<1x128xf32> to vector<10x128xf32>
    %108 = arith.addf %106, %107 : vector<10x128xf32>
    %cst_85 = arith.constant 0.000000e+00 : f32
    %109 = vector.broadcast %cst_85 : f32 to vector<10x128xf32>
    %110 = arith.cmpf ogt, %108, %109 : vector<10x128xf32>
    %111 = vector.broadcast %0 : f32 to vector<10x128xf32>
    %112 = arith.mulf %111, %108 : vector<10x128xf32>
    %113 = arith.select %110, %108, %112 : vector<10x128xi1>, vector<10x128xf32>
    %114 = vector.shape_cast %113 : vector<10x128xf32> to vector<2x5x128xf32>
    %115 = vector.extract_strided_slice %114 {offsets = [0, 0, 0], sizes = [2, 4, 128], strides = [1, 1, 1]} : vector<2x5x128xf32> to vector<2x4x128xf32>
    %cst_86 = arith.constant dense<0xFF800000> : vector<2x128xf32>
    %116 = vector.multi_reduction <maximumf>, %115, %cst_86 [1] : vector<2x4x128xf32> to vector<2x128xf32>
    %117 = vector.shape_cast %116 : vector<2x128xf32> to vector<2x1x128xf32>
    %cst_87 = arith.constant dense<0.000000e+00> : vector<2x128xf32>
    %118 = vector.multi_reduction <add>, %117, %cst_87 [1] : vector<2x1x128xf32> to vector<2x128xf32>
    %cst_88 = arith.constant 1.000000e+00 : f32
    %119 = vector.broadcast %cst_88 : f32 to vector<2x128xf32>
    %120 = arith.divf %118, %119 : vector<2x128xf32>
    %c8 = arith.constant 8 : index
    %c0_89 = arith.constant 0 : index
    %121 = vector.load %arg2[%c8, %c0_89] : memref<136x128xf32, #tpu.memory_space<vmem>>, vector<128x128xf32>
    %cst_90 = arith.constant dense<0.000000e+00> : vector<2x128xf32>
    %122 = tpu.matmul %120, %121, %cst_90 {dimension_numbers = #tpu.dot_dimension_numbers<[1], [0], [0], [1], [0, 0, 1, 1], [], []>} : vector<2x128xf32>, vector<128x128xf32>, vector<2x128xf32> -> vector<2x128xf32>
    %c6_91 = arith.constant 6 : index
    %c0_92 = arith.constant 0 : index
    %123 = vector.load %arg2[%c6_91, %c0_92] : memref<136x128xf32, #tpu.memory_space<vmem>>, vector<1x128xf32>
    %124 = vector.broadcast %123 : vector<1x128xf32> to vector<2x128xf32>
    %125 = arith.addf %122, %124 : vector<2x128xf32>
    %c0_93 = arith.constant 0 : index
    %c0_94 = arith.constant 0 : index
    %126 = vector.load %arg4[%c0_93, %c0_94] : memref<2x128xf32, #tpu.memory_space<vmem>>, vector<2x128xf32>
    tpu.vector_store %arg4[%c0_93, %c0_94], %125 {strides = array<i32>} : memref<2x128xf32, #tpu.memory_space<vmem>>, vector<2x128xf32>,
    return
  }
}

</mosaic_0001>

<bundles_post_ra>
// kernel: tpu_custom_call.1
= control target key start
LH: loop header
LB: loop body
LE: loop exit
PB: predicated region body
PF: predicated region fallthrough
CT: control target
= control target key end

     0   :  { %10 = vsyncpa [#allocation6], 0  ;;  %s3761_s0 = inlined_call_operand.vmem [shape: bf16[40,12], index: 0, kind: input, shape index: {}]   ;;  %s3762_s1 = inlined_call_operand.hbm [shape: bf16[1360,128], index: 1, kind: input, shape index: {}]   ;;  %s3763_s2 = inlined_call_operand.hbm [shape: f32[136,128], index: 2, kind: input, shape index: {}]   ;;  %s3764_s3 = inlined_call_operand.<no memory space> [shape: f32[1], index: 3, kind: input, shape index: {}]   ;;  %s3765_s4 = inlined_call_operand.hbm [shape: f32[2,128], index: 4, kind: output, shape index: {}]  }
   0x1   :  { %11 = vsyncpa [#allocation9], 0 }
   0x2   :  { %12 = vsyncpa [#allocation7], 0  ;;  %s3274_s15 = smov [#allocation5]   ;;  %s3202_s19 = scalar_lea.hbm %s3762_s1, 10880 }
   0x3   :  { %s20_s16 = sshll.u32 %s3274_s15, 4  ;;  %p3203_p0 = scmp.ne.s32.totalorder %s3762_s1, %s3202_s19  ;;  %s21_s16 = int_to_ptr.vmem [resolvable:$true] %s20_s16 }
   0x4   :  { %p3206_p1 = scmp.lt.u32.totalorder %s3202_s19, %s3762_s1 }
   0x6   :  { %p3208_p2 = pnand %p3206_p1, %p3203_p0 }
   0x8   :  { %3211 = shalt.err (!%p3208_p2)
}
   0x9   :  { %s3212_s24 = scalar_lea.vmem %s21_s16, 10880  ;;  %p3217_p4 = scmp.lt.s32.totalorder %s21_s16, %s21_s16 }
   0xa   :  { %p3213_p3 = scmp.ne.s32.totalorder %s21_s16, %s3212_s24  ;;  %p3218_p5 = scmp.lt.s32.totalorder %s3212_s24, %s3212_s24 }
   0xc   :  { %p3219_p6 = por %p3218_p5, %p3217_p4 }
   0xe   :  { %p3220_p7 = pnand %p3219_p6, %p3213_p3 }
  0x10   :  { %3223 = shalt.err (!%p3220_p7)
}
  0x11   :  { %s3275_s25 = smov 64   ;;  %s3276_s26 = smov 4  }
  0x12   :  { %26 = dma.hbm_to_vmem [thread:$0]  %s3762_s1, 10880, %s21_s16, [#allocation6], %s3275_s25, %s3275_s25, %s3276_s26  }
  0x13   :  { %s3277_s29 = smov [#allocation8]   ;;  %s3224_s7 = scalar_lea.hbm %s3763_s2, 2176 }
  0x14   :  { %s32_s30 = sshll.u32 %s3277_s29, 4  ;;  %p3225_p8 = scmp.ne.s32.totalorder %s3763_s2, %s3224_s7  ;;  %s33_s30 = int_to_ptr.vmem [resolvable:$true] %s32_s30 }
  0x15   :  { %p3228_p9 = scmp.lt.u32.totalorder %s3224_s7, %s3763_s2 }
  0x17   :  { %p3230_p10 = pnand %p3228_p9, %p3225_p8 }
  0x19   :  { %3233 = shalt.err (!%p3230_p10)
}
  0x1a   :  { %s3234_s12 = scalar_lea.vmem %s33_s30, 2176  ;;  %p3239_p12 = scmp.lt.s32.totalorder %s33_s30, %s33_s30 }
  0x1b   :  { %p3235_p11 = scmp.ne.s32.totalorder %s33_s30, %s3234_s12  ;;  %p3240_p13 = scmp.lt.s32.totalorder %s3234_s12, %s3234_s12 }
  0x1d   :  { %p3241_p0 = por %p3240_p13, %p3239_p12 }
  0x1f   :  { %p3242_p1 = pnand %p3241_p0, %p3235_p11 }
  0x21   :  { %3245 = shalt.err (!%p3242_p1)
}
  0x22   :  { %s3278_s1 = smov 128   ;;  %s3279_s13 = smov 8  }
  0x23   :  { %38 = dma.hbm_to_vmem [thread:$0]  %s3763_s2, 2176, %s33_s30, [#allocation9], %s3278_s1, %s3278_s1, %s3279_s13  }
  0x24   :  { %3268 = dma.done.wait [#allocation6], 10880  }
  0x25   :  { %3269 = vsyncadd [#allocation6], 4294956416 }
  0x26   :  { %3270 = dma.done.wait [#allocation9], 2176  }
  0x27   :  { %3271 = vsyncadd [#allocation9], 4294965120  ;;  %v3280_v0 = vmov 0.0   ;;  %vm3281_vm0 = vmmov 0   ;;  %vm84_vm1 = vcmask 1045504   ;;  %v3092_v3 = vld [vmem:[%s3761_s0] sm:$0xff]  }
  0x28   :  { %2985 = vmatprep.subr.bf16.mxu0 %v3280_v0  ;;  %2987 = vmatprep.mubr.msk.bf16.mxu0 %vm3281_vm0, %v3280_v0  ;;  %v3091_v1 = vld [vmem:[#allocation5] sm:$0x3f]   ;;  %vm74_vm2 = vcmask 97280   ;;  %v3093_v4 = vld [vmem:[%s3761_s0 + $0x8] sm:$0xff]   ;;  %vm296_vm3 = vcmask 519168   ;;  %v3282_v6 = vmov 0  }
  0x29   :  { %v86_v2 = vsel %vm84_vm1, %v3091_v1, 0  ;;  %v3094_v5 = vld [vmem:[%s3761_s0 + $0x10] ss:$0 sps:$4 sm:$0xff]   ;;  %297 = vst.msk [vmem:[#allocation2] sm:$0xf] %vm296_vm3, %v3282_v6  ;;  %vm1447_vm5 = vcmask 1041408  }
  0x2a   :  { %2986 = vmatpush3.bf16.msra.mxu0 %v86_v2  ;;  %298 = vst.msk [vmem:[#allocation2 + $0x4] sm:$0xf] %vm296_vm3, %v3282_v6  ;;  %299 = vst.msk [vmem:[#allocation2 + $0x8] sm:$0xf] %vm296_vm3, %v3282_v6  ;;  %vm334_vm4 = vsmask.f32 1280 }
  0x2b   :  { %302 = vst.msk [vmem:[#allocation2 + $0x10] sm:$0xf] %vm296_vm3, %v3282_v6  ;;  %303 = vst.msk [vmem:[#allocation2 + $0x14] sm:$0xf] %vm296_vm3, %v3282_v6  ;;  %1119 = vmatprep.subr.bf16.mxu0 %v3282_v6  ;;  %v1449_v7 = vld [vmem:[#allocation3 + $0x4] sm:$0x3] }
  0x2c   :  { %304 = vst.msk [vmem:[#allocation2 + $0x18] sm:$0xf] %vm296_vm3, %v3282_v6  ;;  %1446 = vst [vmem:[#allocation3] sm:$0xf] %v3282_v6  ;;  %v1453_v8 = vld [vmem:[#allocation3 + $0xc] sm:$0x3] }
  0x2d   :  { %2988 = vmatmul.mubr.msk.bf16.vlgmr.msra.gmra.mrb[0].mxu0 %vm74_vm2, %v3092_v3  ;;  %1452 = vst [vmem:[#allocation3 + $0x8] sm:$0xf] %v3282_v6  ;;  %vm1448_vm6 = vmand %vm1447_vm5, %vm334_vm4  ;;  %vm300_vm7 = vcmask 516096   ;;  %vm146_vm8 = vcmask 523264   ;;  %v3102_v25 = vld [vmem:[#allocation5 + $0x88] sm:$0xff]   ;;  %v3103_v29 = vld [vmem:[#allocation5 + $0x90] sm:$0xff]  }
  0x2e   :  { %2991 = vmatprep.mubr.msk.bf16.mxu0 %vm3281_vm0, %v3280_v0  ;;  %v1450_v9 = vsel %vm1448_vm6, 0, %v1449_v7  ;;  %v1454_v10 = vsel %vm1448_vm6, 0, %v1453_v8  ;;  %301 = vst.msk [vmem:[#allocation2 + $0xc] sm:$0x1] %vm300_vm7, %v3282_v6  ;;  %305 = vst.msk [vmem:[#allocation2 + $0x1c] sm:$0x1] %vm300_vm7, %v3282_v6  ;;  %1120 = vmatpush1.bf16.msra.mxu0 %v3102_v25 }
  0x2f   :  { %1451 = vst [vmem:[#allocation3 + $0x4] sm:$0x3] %v1450_v9  ;;  %1455 = vst [vmem:[#allocation3 + $0xc] sm:$0x3] %v1454_v10  ;;  %v3106_v27 = vld [vmem:[#allocation5 + $0x48] sm:$0xff]   ;;  %v3109_v30 = vld [vmem:[#allocation5 + $0x50] sm:$0xff]   ;;  %1121 = vmatprep.subr.bf16.mxu0 %v3282_v6 }
  0x30   :  { %v3107_v28 = vld [vmem:[#allocation5 + $0x8] sm:$0xff]   ;;  %2859 = vmatprep.subr.bf16.mxu1 %v3106_v27  ;;  %v3110_v31 = vld [vmem:[#allocation5 + $0x10] sm:$0xff]   ;;  %v3112_v33 = vld [vmem:[#allocation5 + $0x58] sm:$0xff]   ;;  %vm335_vm14 = vsmask.f32 5392  ;;  %vm399_vm15 = vcmask 519169  }
  0x31   :  { %2860 = vmatpush3.bf16.msra.mxu1 %v3107_v28  ;;  %v3104_v36 = vld [vmem:[#allocation5 + $0x98] sm:$0xff]   ;;  %v3115_v42 = vld [vmem:[#allocation5 + $0x60] sm:$0xff]   ;;  %v3118_v47 = vld [vmem:[#allocation5 + $0x68] sm:$0xff]   ;;  %vm407_vm7 = vsmask.f32 3328 }
  0x32   :  { %2861 = vmatprep.subr.bf16.mxu1 %v3109_v30  ;;  %1122 = vmatpush1.bf16.msra.mxu0 %v3103_v29  ;;  %v3113_v40 = vld [vmem:[#allocation5 + $0x18] sm:$0xff]   ;;  %v3105_v43 = vld [vmem:[#allocation5 + $0xa0] sm:$0xff]   ;;  %v3108_v48 = vld [vmem:[#allocation5 + $0xa8] sm:$0xff]  }
  0x33   :  { %1123 = vmatprep.subr.bf16.mxu0 %v3282_v6  ;;  %v3116_v45 = vld [vmem:[#allocation5 + $0x20] sm:$0xff]   ;;  %v3119_v50 = vld [vmem:[#allocation5 + $0x28] sm:$0xff]   ;;  %v3111_v52 = vld [vmem:[#allocation5 + $0xb0] sm:$0xff]  }
  0x34   :  { %v3114_v55 = vld [vmem:[#allocation5 + $0xb8] sm:$0xff]   ;;  %v3117_v1 = vld [vmem:[#allocation5 + $0xc0] sm:$0xff]   ;;  %v3120_v10 = vld [vmem:[#allocation5 + $0xc8] sm:$0xff]  }
  0x35   :  { %2992 = vmatmul.mubr.msk.bf16.gmra.mrb[4].mxu0 %vm74_vm2, %v3093_v4  ;;  %2862 = vmatpush3.bf16.msra.mxu1 %v3110_v31  ;;  %v2694_v28 = vld [vmem:[#allocation8 + $0x1] ss:$0 sm:$0xff] }
  0x36   :  { %2995 = vmatprep.mubr.msk.bf16.mxu0 %vm3281_vm0, %v3280_v0  ;;  %2863 = vmatprep.subr.bf16.mxu1 %v3112_v33 }
  0x37   :  { %1124 = vmatpush1.bf16.msra.mxu0 %v3104_v36 }
  0x38   :  { %1125 = vmatprep.subr.bf16.mxu0 %v3282_v6 }
  0x39   :  { %2864 = vmatpush3.bf16.msra.mxu1 %v3113_v40 }
  0x3a   :  { %2865 = vmatprep.subr.bf16.mxu1 %v3115_v42 }
  0x3b   :  { %1126 = vmatpush1.bf16.msra.mxu0 %v3105_v43 }
  0x3c   :  { %1127 = vmatprep.subr.bf16.mxu0 %v3282_v6 }
  0x3d   :  { %2996 = vmatmul.mubr.msk.bf16.gmra.mrb[8].mxu0 %vm74_vm2, %v3094_v5  ;;  %2866 = vmatpush3.bf16.msra.mxu1 %v3116_v45  ;;  %vm400_vm2 = vsmask.f32 7942 }
  0x3e   :  { %2867 = vmatprep.subr.bf16.mxu1 %v3118_v47  ;;  %vm3413_vm6 = vmand %vm399_vm15, %vm400_vm2 }
  0x3f   :  { %1128 = vmatpush1.bf16.msra.mxu0 %v3108_v48 }
  0x40   :  { %1129 = vmatprep.subr.bf16.mxu0 %v3282_v6 }
  0x41   :  { %2868 = vmatpush3.bf16.msra.mxu1 %v3119_v50 }
  0x43   :  { %1130 = vmatpush1.bf16.msra.mxu0 %v3111_v52 }
  0x44   :  { %1131 = vmatprep.subr.bf16.mxu0 %v3282_v6 }
  0x47   :  { %1132 = vmatpush1.bf16.msra.mxu0 %v3114_v55 }
  0x48   :  { %1133 = vmatprep.subr.bf16.mxu0 %v3282_v6 }
  0x4b   :  { %1134 = vmatpush1.bf16.msra.mxu0 %v3117_v1 }
  0x4c   :  { %1135 = vmatprep.subr.bf16.mxu0 %v3282_v6 }
  0x4f   :  { %1136 = vmatpush1.bf16.msra.mxu0 %v3120_v10 }
  0x50   :  { %1137 = vmatprep.subr.bf16.mxu0 %v3282_v6 }
 0x100   :  { %v3374_v11 = vpop.f32.mrb[0].mxu0 }
 0x101   :  { %v2989_v12 = vpop.f32.mrb[1].mxu0  ;;  %v147_v14 = vsel %vm146_vm8, %v3374_v11, 0.0 }
 0x102   :  { %v3376_v13 = vpop.f32.mrb[2].mxu0 }
 0x103   :  { %v148_v15 = vsel %vm146_vm8, %v3376_v13, 0.0  ;;  %v2990_v16 = vpop.f32.mrb[3].mxu0 }
 0x104   :  { %v149_v17 = vadd.f32 %v148_v15, %v147_v14 }
 0x108   :  { %v130_v18 = vpop.f32.mrb[4].mxu0 }
 0x109   :  { %v150_v19 = vsel %vm146_vm8, %v130_v18, 0.0  ;;  %v2993_v20 = vpop.f32.mrb[5].mxu0 }
 0x10a   :  { %v151_v21 = vadd.f32 %v150_v19, %v149_v17  ;;  %v133_v22 = vpop.f32.mrb[6].mxu0 }
 0x10b   :  { %v152_v23 = vsel %vm146_vm8, %v133_v22, 0.0  ;;  %v2994_v24 = vpop.f32.mrb[7].mxu0 }
 0x10c   :  { %v153_v26 = vadd.f32 %v152_v23, %v151_v21  ;;  %v2693_v23 = vld [vmem:[#allocation8] ss:$0 sm:$0xff] }
 0x110   :  { %v138_v32 = vpop.f32.mrb[8].mxu0 }
 0x111   :  { %v154_v34 = vsel %vm146_vm8, %v138_v32, 0.0  ;;  %v2997_v35 = vpop.f32.mrb[9].mxu0 }
 0x112   :  { %v155_v37 = vadd.f32 %v154_v34, %v153_v26  ;;  %v141_v38 = vpop.f32.mrb[10].mxu0  ;;  %v3404_v35 = vstv %s3764_s3  ;;  %s3286_s3 = smov [#allocation10]  }
 0x113   :  { %v2998_v39 = vpop.f32.mrb[11].mxu0  ;;  %s2676_s22 = sshll.u32 %s3286_s3, 4  ;;  %s2677_s22 = int_to_ptr.vmem [resolvable:$true] %s2676_s22 }
 0x114   :  { %v156_v41 = vrot.slane %v155_v37, 4  ;;  %s3246_s23 = scalar_lea.vmem %s2677_s22, 32  ;;  %p3251_p3 = scmp.lt.s32.totalorder %s2677_s22, %s2677_s22 }
 0x115   :  { %p3247_p2 = scmp.ne.s32.totalorder %s2677_s22, %s3246_s23  ;;  %p3252_p4 = scmp.lt.s32.totalorder %s3246_s23, %s3246_s23 }
 0x116   :  { %v157_v44 = vadd.f32 %v156_v41, %v155_v37 }
 0x117   :  { %p3253_p5 = por %p3252_p4, %p3251_p3 }
 0x118   :  { %v158_v46 = vrot.slane %v157_v44, 2 }
 0x119   :  { %p3254_p6 = pnand %p3253_p5, %p3247_p2 }
 0x11a   :  { %v159_v49 = vadd.f32 %v158_v46, %v157_v44 }
 0x11c   :  { %v160_v51 = vrot.slane %v159_v49, 1 }
 0x11e   :  { %v161_v53 = vadd.f32 %v160_v51, %v159_v49 }
 0x120   :  { %v162_v54 = vmul.f32 0.025, %v161_v53 }
 0x122   :  { %v163_v56 = vsub.f32 %v3374_v11, %v162_v54  ;;  %v164_v57 = vsub.f32 %v3376_v13, %v162_v54  ;;  %v165_v58 = vsub.f32 %v130_v18, %v162_v54  ;;  %v166_v59 = vsub.f32 %v133_v22, %v162_v54 }
 0x123   :  { %v167_v60 = vsub.f32 %v138_v32, %v162_v54 }
 0x124   :  { %v168_v61 = vmul.f32 %v163_v56, %v163_v56  ;;  %v169_v62 = vmul.f32 %v164_v57, %v164_v57  ;;  %v170_v63 = vmul.f32 %v165_v58, %v165_v58  ;;  %v171_v2 = vmul.f32 %v166_v59, %v166_v59 }
 0x125   :  { %v172_v7 = vmul.f32 %v167_v60, %v167_v60 }
 0x126   :  { %v173_v3 = vsel %vm146_vm8, %v168_v61, 0.0  ;;  %v174_v4 = vsel %vm146_vm8, %v169_v62, 0.0  ;;  %v176_v8 = vsel %vm146_vm8, %v170_v63, 0.0  ;;  %v178_v11 = vsel %vm146_vm8, %v171_v2, 0.0 }
 0x127   :  { %v175_v5 = vadd.f32 %v174_v4, %v173_v3  ;;  %v180_v13 = vsel %vm146_vm8, %v172_v7, 0.0 }
 0x129   :  { %v177_v9 = vadd.f32 %v176_v8, %v175_v5 }
 0x12b   :  { %v179_v12 = vadd.f32 %v178_v11, %v177_v9 }
 0x12d   :  { %v181_v14 = vadd.f32 %v180_v13, %v179_v12 }
 0x12f   :  { %v182_v15 = vrot.slane %v181_v14, 4 }
 0x131   :  { %v183_v16 = vadd.f32 %v182_v15, %v181_v14 }
 0x133   :  { %v184_v17 = vrot.slane %v183_v16, 2 }
 0x135   :  { %v185_v18 = vadd.f32 %v184_v17, %v183_v16 }
 0x137   :  { %v186_v19 = vrot.slane %v185_v18, 1 }
 0x139   :  { %v187_v20 = vadd.f32 %v186_v19, %v185_v18 }
 0x13b   :  { %v188_v21 = vmul.f32 0.025, %v187_v20 }
 0x13d   :  { %3196 = vrsqrt.f32 %v188_v21 }
 0x147   :  { %v3197_v22 = vpop.eup %3196 }
 0x148   :  { %v190_v24 = vmul.f32 %v3197_v22, %v163_v56  ;;  %v191_v25 = vmul.f32 %v3197_v22, %v164_v57  ;;  %v192_v26 = vmul.f32 %v3197_v22, %v165_v58  ;;  %v193_v27 = vmul.f32 %v3197_v22, %v166_v59 }
 0x149   :  { %v194_v29 = vmul.f32 %v3197_v22, %v167_v60 }
 0x14a   :  { %v199_v30 = vmul.f32 %v2693_v23, %v190_v24  ;;  %v200_v31 = vmul.f32 %v2693_v23, %v191_v25  ;;  %v201_v32 = vmul.f32 %v2693_v23, %v192_v26  ;;  %v202_v33 = vmul.f32 %v2693_v23, %v193_v27 }
 0x14b   :  { %v203_v34 = vmul.f32 %v2693_v23, %v194_v29  ;;  %v402_v23 = vld [vmem:[#allocation2] sm:$0xe] }
 0x14c   :  { %v208_v36 = vadd.f32 %v2694_v28, %v199_v30  ;;  %v209_v37 = vadd.f32 %v2694_v28, %v200_v31  ;;  %v210_v38 = vadd.f32 %v2694_v28, %v201_v32  ;;  %v211_v39 = vadd.f32 %v2694_v28, %v202_v33 }
 0x14d   :  { %v212_v40 = vadd.f32 %v2694_v28, %v203_v34  ;;  %v412_v28 = vld [vmem:[#allocation2 + $0x10] sm:$0xe] }
 0x14e   :  { %vm213_vm9 = vcmp.gt.f32.partialorder %v208_v36, 0.0  ;;  %vm214_vm10 = vcmp.gt.f32.partialorder %v209_v37, 0.0  ;;  %vm215_vm11 = vcmp.gt.f32.partialorder %v210_v38, 0.0  ;;  %vm216_vm12 = vcmp.gt.f32.partialorder %v211_v39, 0.0 }
 0x14f   :  { %vm217_vm13 = vcmp.gt.f32.partialorder %v212_v40, 0.0  ;;  %v219_v41 = vmul.f32 %v3404_v35, %v208_v36  ;;  %v220_v42 = vmul.f32 %v3404_v35, %v209_v37  ;;  %v221_v43 = vmul.f32 %v3404_v35, %v210_v38 }
 0x150   :  { %v222_v44 = vmul.f32 %v3404_v35, %v211_v39  ;;  %v223_v45 = vmul.f32 %v3404_v35, %v212_v40 }
 0x151   :  { %v224_v46 = vsel %vm213_vm9, %v208_v36, %v219_v41  ;;  %v225_v47 = vsel %vm214_vm10, %v209_v37, %v220_v42  ;;  %v226_v48 = vsel %vm215_vm11, %v210_v38, %v221_v43  ;;  %vm3419_vm9 = vmor %vm334_vm4, %vm335_vm14  ;;  %vm459_vm4 = vsmask.f32 7424 }
 0x152   :  { %v227_v49 = vsel %vm216_vm12, %v211_v39, %v222_v44  ;;  %v228_v50 = vsel %vm217_vm13, %v212_v40, %v223_v45  ;;  %v234_v51 = vcombine.high %v224_v46, %v224_v46  ;;  %v235_v52 = vcombine.high %v225_v47, %v225_v47  ;;  %vm3427_vm10 = vmand %vm296_vm3, %vm407_vm7  ;;  %v409_v40 = vld [vmem:[#allocation2 + $0x8] sm:$0xf] }
 0x153   :  { %v236_v53 = vcombine.high %v226_v48, %v226_v48  ;;  %v237_v54 = vcombine.high %v227_v49, %v227_v49  ;;  %v238_v55 = vcombine.high %v228_v50, %v228_v50  ;;  %v2841_v56 = vpack.c.bf16 %v226_v48, %v226_v48 }
 0x154   :  { %v306_v57 = vcombine.low %v224_v46, %v234_v51  ;;  %v307_v58 = vcombine.low %v225_v47, %v235_v52  ;;  %v416_v51 = vld [vmem:[#allocation2 + $0x18] sm:$0xf]  ;;  %vm517_vm11 = vsmask.f32 6400  ;;  %vm628_vm12 = vcmask 1044480  }
 0x155   :  { %v308_v59 = vcombine.low %v236_v53, %v227_v49  ;;  %v309_v60 = vcombine.low %v237_v54, %v228_v50  ;;  %v2844_v61 = vpack.c.bf16 %v238_v55, %v238_v55  ;;  %v357_v62 = vshrl.u32 %v2841_v56, 16 }
 0x156   :  { %v2839_v63 = vpack.c.bf16 %v306_v57, %v306_v57  ;;  %v2840_v1 = vpack.c.bf16 %v307_v58, %v307_v58  ;;  %v360_v2 = vshll.u32 %v2841_v56, 16  ;;  %v433_v56 = vld [vmem:[#allocation2 + $0xc] sm:$0x1]  ;;  %vm504_vm13 = vcmask 1046528  }
 0x157   :  { %v2842_v3 = vpack.c.bf16 %v308_v59, %v308_v59  ;;  %v2843_v4 = vpack.c.bf16 %v309_v60, %v309_v60  ;;  %v359_v5 = vrot.slane %v357_v62, 6  ;;  %v385_v7 = vshrl.u32 %v2844_v61, 16  ;;  %v3121_v60 = vld [vmem:[#allocation5 + $0x70] sm:$0xff]  }
 0x158   :  { %v338_v8 = vshrl.u32 %v2839_v63, 16  ;;  %v341_v9 = vshll.u32 %v2839_v63, 16  ;;  %v347_v10 = vshrl.u32 %v2840_v1, 16  ;;  %v350_v11 = vshll.u32 %v2840_v1, 16  ;;  %2869 = vmatprep.subr.bf16.mxu1 %v3121_v60 }
 0x159   :  { %v362_v12 = vrot.slane %v360_v2, 7  ;;  %v366_v13 = vshrl.u32 %v2842_v3, 16  ;;  %v369_v14 = vshll.u32 %v2842_v3, 16  ;;  %v375_v15 = vshrl.u32 %v2843_v4, 16  ;;  %v3123_v2 = vld [vmem:[#allocation5 + $0xd0] sm:$0xff]  }
 0x15a   :  { %v340_v16 = vrot.slane %v338_v8, 6  ;;  %v343_v17 = vrot.slane %v341_v9, 7  ;;  %v349_v18 = vrot.slane %v347_v10, 6  ;;  %v352_v19 = vrot.slane %v350_v11, 7  ;;  %1138 = vmatpush1.bf16.msra.mxu0 %v3123_v2 }
 0x15b   :  { %v368_v20 = vrot.slane %v366_v13, 6  ;;  %v371_v21 = vrot.slane %v369_v14, 7  ;;  %v377_v26 = vrot.slane %v375_v15, 6  ;;  %v378_v27 = vshll.u32 %v2843_v4, 16  ;;  %1139 = vmatprep.subr.bf16.mxu0 %v3282_v6 }
 0x15c   :  { %v344_v24 = vor.u32 %v343_v17, %v340_v16  ;;  %v353_v25 = vor.u32 %v352_v19, %v349_v18  ;;  %v363_v30 = vor.u32 %v362_v12, %v359_v5  ;;  %v387_v32 = vrot.slane %v385_v7, 6 }
 0x15d   :  { %v372_v31 = vor.u32 %v371_v21, %v368_v20  ;;  %v388_v33 = vshll.u32 %v2844_v61, 16  ;;  %v380_v37 = vrot.slane %v378_v27, 7  ;;  %v3122_v61 = vld [vmem:[#allocation5 + $0x30] sm:$0xff]   ;;  %v434_v27 = vld [vmem:[#allocation2 + $0x1c] sm:$0x1]  ;;  %vm1263_vm7 = vcmask 1043456  }
 0x15e   :  { %v345_v34 = vrot.slane %v344_v24, 4  ;;  %v355_v36 = vrot.slane %v353_v25, 4  ;;  %v403_v38 = vsel %vm3413_vm6, %v344_v24, %v402_v23  ;;  %2870 = vmatpush3.bf16.msra.mxu1 %v3122_v61 }
 0x15f   :  { %v373_v41 = vrot.slane %v372_v31, 4  ;;  %v390_v42 = vrot.slane %v388_v33, 7  ;;  %404 = vst [vmem:[#allocation2] sm:$0xe] %v403_v38  ;;  %v413_v43 = vsel %vm3413_vm6, %v372_v31, %v412_v28  ;;  %v381_v46 = vor.u32 %v380_v37, %v377_v26 }
 0x160   :  { %v354_v44 = vsel %vm3419_vm9, %v345_v34, %v353_v25  ;;  %v364_v45 = vsel %vm3419_vm9, %v355_v36, %v363_v30  ;;  %414 = vst [vmem:[#allocation2 + $0x10] sm:$0xe] %v413_v43 }
 0x161   :  { %405 = vst.msk [vmem:[#allocation2 + $0x4] sm:$0xf] %vm296_vm3, %v354_v44  ;;  %v410_v47 = vsel %vm3427_vm10, %v364_v45, %v409_v40  ;;  %v382_v48 = vsel %vm3419_vm9, %v373_v41, %v381_v46  ;;  %v383_v49 = vrot.slane %v381_v46, 4  ;;  %v391_v50 = vor.u32 %v390_v42, %v387_v32 }
 0x162   :  { %411 = vst [vmem:[#allocation2 + $0x8] sm:$0xf] %v410_v47  ;;  %415 = vst.msk [vmem:[#allocation2 + $0x14] sm:$0xf] %vm296_vm3, %v382_v48  ;;  %vm579_vm3 = vsmask.f32 5376 }
 0x163   :  { %v392_v52 = vsel %vm3419_vm9, %v383_v49, %v391_v50  ;;  %v3124_v50 = vld [vmem:[#allocation5 + $0x78] sm:$0xff]   ;;  %vm1506_vm9 = vcmask 1044484  }
 0x164   :  { %v417_v53 = vsel %vm3427_vm10, %v392_v52, %v416_v51  ;;  %v3125_v51 = vld [vmem:[#allocation5 + $0x38] sm:$0xff]   ;;  %2871 = vmatprep.subr.bf16.mxu1 %v3124_v50  ;;  %vm1508_vm10 = vcmask 1045509  }
 0x165   :  { %418 = vst [vmem:[#allocation2 + $0x18] sm:$0xf] %v417_v53  ;;  %v3126_v52 = vld [vmem:[#allocation5 + $0xd8] sm:$0xff]   ;;  %2872 = vmatpush3.bf16.msra.mxu1 %v3125_v51 }
 0x166   :  { %v419_v54 = vld [vmem:[#allocation2] sm:$0xf]  ;;  %1140 = vmatpush1.bf16.msra.mxu0 %v3126_v52 }
 0x167   :  { %v431_v55 = vld [vmem:[#allocation2] sm:$0xc]  ;;  %v422_v58 = vld [vmem:[#allocation2 + $0x10] sm:$0xf]  ;;  %1141 = vmatprep.subr.bf16.mxu0 %v3282_v6 }
 0x168   :  { %v427_v57 = vld [vmem:[#allocation2] sm:$0xe]  ;;  %v3447_v59 = vld [vmem:[#allocation2 + $0x4] sm:$0xf]  ;;  %v432_v7 = vld [vmem:[#allocation2 + $0x10] sm:$0xc] }
 0x169   :  { %v3450_v62 = vcombine.low %v419_v54, %v3447_v59  ;;  %v3452_v63 = vld [vmem:[#allocation2 + $0x8] ss:$0 sps:$4 sm:$0x77]   ;;  %v3455_v1 = vcombine.low %v431_v55, %v3447_v59  ;;  %v3457_v3 = vld [vmem:[#allocation2 + $0x14] sm:$0xf]  ;;  %v3460_v5 = vcombine.low %v427_v57, %v3447_v59 }
 0x16a   :  { %v429_v4 = vld [vmem:[#allocation2 + $0x8] sm:$0xf]  ;;  %v3463_v8 = vcombine.low %v422_v58, %v3457_v3  ;;  %v468_v11 = vshll.u32 %v3452_v63, 16  ;;  %v428_v12 = vld [vmem:[#allocation2 + $0x10] sm:$0xe]  ;;  %v3481_v20 = vcombine.low %v432_v7, %v3457_v3 }
 0x16b   :  { %v461_v9 = vshrl.u32 %v3450_v62, 16  ;;  %v463_v10 = vshll.u32 %v3450_v62, 16  ;;  %v3468_v13 = vcombine.low %v429_v4, %v433_v56  ;;  %v581_v14 = vshrl.u32 %v3455_v1, 16  ;;  %v3474_v17 = vld [vmem:[#allocation2] sm:$0x8]  ;;  %v3129_v6 = vld [vmem:[#allocation5 + $0xe0] sm:$0xff]  }
 0x16c   :  { %v584_v15 = vshll.u32 %v3455_v1, 16  ;;  %v3472_v16 = vcombine.low %v429_v4, %v429_v4  ;;  %v3477_v18 = vld [vmem:[#allocation2 + $0x18] ss:$0 sps:$4 sm:$0x77]   ;;  %v476_v19 = vshrl.u32 %v3463_v8, 16  ;;  %v3484_v21 = vcombine.low %v428_v12, %v3457_v3  ;;  %1142 = vmatpush1.bf16.msra.mxu0 %v3129_v6 }
 0x16d   :  { %v2715_v22 = vcombine.low %v3474_v17, %v3447_v59  ;;  %v478_v23 = vshll.u32 %v3463_v8, 16  ;;  %v465_v24 = vrot.slane %v463_v10, 1  ;;  %v3489_v25 = vrot.slane %v468_v11, 1  ;;  %v430_v37 = vld [vmem:[#allocation2 + $0x18] sm:$0xf] }
 0x16e   :  { %v583_v26 = vrot.slane %v581_v14, 2  ;;  %v483_v28 = vshll.u32 %v3477_v18, 16  ;;  %v586_v29 = vrot.slane %v584_v15, 3  ;;  %v589_v30 = vshrl.u32 %v3468_v13, 16 }
 0x16f   :  { %v592_v31 = vshll.u32 %v3468_v13, 16  ;;  %v480_v32 = vrot.slane %v478_v23, 1  ;;  %v466_v33 = vor.u32 %v465_v24, %v461_v9  ;;  %v519_v34 = vshrl.u32 %v3460_v5, 16 }
 0x170   :  { %v522_v36 = vshll.u32 %v3460_v5, 16  ;;  %v3496_v38 = vrot.slane %v483_v28, 1  ;;  %v587_v39 = vor.u32 %v586_v29, %v583_v26  ;;  %v591_v40 = vrot.slane %v589_v30, 2 }
 0x171   :  { %v594_v41 = vrot.slane %v592_v31, 3  ;;  %v481_v42 = vor.u32 %v480_v32, %v476_v19  ;;  %v471_v43 = vsel %vm459_vm4, %v466_v33, %v3489_v25  ;;  %v521_v44 = vrot.slane %v519_v34, 1  ;;  %v3127_v32 = vld [vmem:[#allocation5 + $0x80] sm:$0xff]  }
 0x172   :  { %v524_v45 = vrot.slane %v522_v36, 2  ;;  %490 = vrot.lane.b32.xlu0 %v471_v43, %s3275_s25  ;;  %v527_v47 = vshrl.u32 %v3472_v16, 16  ;;  %v530_v48 = vshll.u32 %v3472_v16, 16  ;;  %v3505_v49 = vcombine.low %v430_v37, %v434_v27  ;;  %v3128_v33 = vld [vmem:[#allocation5 + $0x40] sm:$0xff]   ;;  %2873 = vmatprep.subr.bf16.mxu1 %v3127_v32 }
 0x173   :  { %v3501_v46 = vor.u32 %v594_v41, %v591_v40  ;;  %v486_v53 = vsel %vm459_vm4, %v481_v42, %v3496_v38  ;;  %v598_v55 = vshrl.u32 %v3481_v20, 16  ;;  %v601_v56 = vshll.u32 %v3481_v20, 16  ;;  %2874 = vmatpush3.bf16.msra.mxu1 %v3128_v33 }
 0x174   :  { %v525_v54 = vor.u32 %v524_v45, %v521_v44  ;;  %494 = vrot.lane.b32.xlu1 %v486_v53, %s3275_s25  ;;  %v529_v58 = vrot.slane %v527_v47, 1  ;;  %v532_v60 = vrot.slane %v530_v48, 2  ;;  %v606_v61 = vshrl.u32 %v3505_v49, 16  ;;  %v436_v45 = vld [vmem:[#allocation2 + $0x10] sm:$0x8] }
 0x175   :  { %v596_v57 = vsel %vm579_vm3, %v587_v39, %v3501_v46  ;;  %v600_v2 = vrot.slane %v598_v55, 2  ;;  %v603_v4 = vrot.slane %v601_v56, 3  ;;  %v609_v7 = vshll.u32 %v3505_v49, 16 }
 0x176   :  { %v3516_v9 = vcombine.low %v430_v37, %v430_v37  ;;  %v533_v10 = vor.u32 %v532_v60, %v529_v58  ;;  %v608_v11 = vrot.slane %v606_v61, 2  ;;  %v536_v12 = vshrl.u32 %v3484_v21, 16 }
 0x177   :  { %v539_v14 = vshll.u32 %v3484_v21, 16  ;;  %v604_v15 = vor.u32 %v603_v4, %v600_v2  ;;  %v611_v19 = vrot.slane %v609_v7, 3  ;;  %v568_v36 = vrot.slane %v3472_v16, 2 }
 0x178   :  { %v544_v23 = vshrl.u32 %v3516_v9, 16  ;;  %v547_v24 = vshll.u32 %v3516_v9, 16  ;;  %614 = vrot.lane.b32.xlu1 %v596_v57, %s3275_s25  ;;  %v534_v26 = vsel %vm517_vm11, %v525_v54, %v533_v10  ;;  %v538_v27 = vrot.slane %v536_v12, 1 }
 0x179   :  { %v541_v28 = vrot.slane %v539_v14, 2  ;;  %552 = vrot.lane.b32.xlu0 %v534_v26, %s3275_s25  ;;  %v612_v29 = vor.u32 %v611_v19, %v608_v11  ;;  %v629_v37 = vrot.slane %v2715_v22, 3  ;;  %v630_v41 = vrot.slane %v3468_v13, 3 }
 0x17a   :  { %v546_v30 = vrot.slane %v544_v23, 1  ;;  %v549_v31 = vrot.slane %v547_v24, 2  ;;  %v567_v42 = vrot.slane %v3455_v1, 2  ;;  %v505_v59 = vrot.slane %v3460_v5, 1 }
 0x17b   :  { %v542_v34 = vor.u32 %v541_v28, %v538_v27  ;;  %v613_v39 = vsel %vm579_vm3, %v604_v15, %v612_v29  ;;  %v631_v44 = vsel %vm628_vm12, %v629_v37, %v630_v41  ;;  %v472_v17 = vshrl.u32 %v3452_v63, 16 }
 0x17c   :  { %v550_v40 = vor.u32 %v549_v31, %v546_v30  ;;  %618 = vrot.lane.b32.xlu1 %v613_v39, %s3275_s25  ;;  %v569_v22 = vsel %vm84_vm1, %v567_v42, %v568_v36  ;;  %v506_v1 = vrot.slane %v3452_v63, 1  ;;  %v570_v47 = vrot.slane %v3481_v20, 2 }
 0x17d   :  { %v487_v48 = vshrl.u32 %v3477_v18, 16  ;;  %v571_v50 = vrot.slane %v3516_v9, 2  ;;  %v2716_v51 = vcombine.low %v436_v45, %v3457_v3  ;;  %v633_v5 = vrot.slane %v3505_v49, 3 }
 0x17e   :  { %v551_v43 = vsel %vm517_vm11, %v542_v34, %v550_v40  ;;  %v474_v52 = vor.u32 %v472_v17, %v3489_v25  ;;  %v507_v53 = vsel %vm504_vm13, %v505_v59, %v506_v1  ;;  %v508_v54 = vrot.slane %v3484_v21, 1 }
 0x17f   :  { %556 = vrot.lane.b32.xlu0 %v551_v43, %s3275_s25  ;;  %v509_v63 = vrot.slane %v3477_v18, 1  ;;  %v572_v20 = vsel %vm84_vm1, %v570_v47, %v571_v50  ;;  %v632_v55 = vrot.slane %v2716_v51, 3  ;;  %v489_v3 = vor.u32 %v487_v48, %v3496_v38  ;;  %v3130_v47 = vld [vmem:[#allocation2 + $0x8] ss:$0 sps:$4 sm:$0x33]  }
 0x180   :  { %554 = vrot.lane.b32.xlu1 %v533_v10, %s3275_s25  ;;  %v3283_v21 = vmov 1983009808   ;;  %v688_v38 = vlaneseq  ;;  %vm1510_vm4 = vcmask 1046534   ;;  %vm1522_vm3 = vcmask 1043457  }
 0x181   :  { %v510_v56 = vsel %vm504_vm13, %v508_v54, %v509_v63  ;;  %v634_v25 = vsel %vm628_vm12, %v632_v55, %v633_v5  ;;  %v686_v57 = vunpack.c.l.s4 %v3283_v21  ;;  %vm1512_vm11 = vcmask 1047559   ;;  %vm3660_vm12 = vmand %vm1522_vm3, %vm400_vm2 }
 0x182   :  { %v3571_v2 = vshrl.u32 %v688_v38, 7  ;;  %vm2596_vm2 = vcmask 1041409  }
 0x183   :  { %492 = vrot.lane.b32.xlu0 %v474_v52, %s3275_s25  ;;  %v687_v61 = vunpack.c.0.s8 %v686_v57 }
 0x184   :  { %496 = vrot.lane.b32.xlu1 %v489_v3, %s3275_s25 }
 0x185   :  { %v3574_v4 = vsub.s32 %v687_v61, %v3571_v2 }
 0x187   :  { %616 = vrot.lane.b32.xlu0 %v3501_v46, %s3275_s25 }
 0x188   :  { %620 = vrot.lane.b32.xlu1 %v612_v29, %s3275_s25 }
 0x18b   :  { %558 = vrot.lane.b32.xlu0 %v550_v40, %s3275_s25 }
 0x1e4   :  { %v491_v58 = vpop.permute.xlu0 %490 }
 0x1e5   :  { %v636_v46 = vsel %vm146_vm8, %v3450_v62, %v491_v58 }
 0x1e6   :  { %v495_v60 = vpop.permute.xlu1 %494 }
 0x1e7   :  { %v641_v34 = vsel %vm146_vm8, %v3463_v8, %v495_v60 }
 0x1ea   :  { %v615_v7 = vpop.permute.xlu1 %614 }
 0x1eb   :  { %v659_v10 = vsel %vm146_vm8, %v569_v22, %v615_v7  ;;  %v553_v11 = vpop.permute.xlu0 %552 }
 0x1ec   :  { %v683_v12 = vcombine.low %v659_v10, %v631_v44  ;;  %v684_v14 = vcombine.high %v659_v10, %v631_v44  ;;  %v647_v15 = vsel %vm146_vm8, %v507_v53, %v553_v11  ;;  %v3131_v11 = vld [vmem:[#allocation2 + $0x18] ss:$0 sps:$4 sm:$0x33]  }
 0x1ed   :  { %v681_v19 = vcombine.low %v636_v46, %v647_v15  ;;  %v682_v23 = vcombine.high %v636_v46, %v647_v15 }
 0x1ee   :  { %v705_v24 = vrot.slane %v683_v12, %v3574_v4  ;;  %v712_v26 = vrot.slane %v684_v14, %v3574_v4  ;;  %v619_v27 = vpop.permute.xlu1 %618 }
 0x1ef   :  { %v665_v28 = vsel %vm146_vm8, %v572_v20, %v619_v27  ;;  %v691_v29 = vrot.slane %v681_v19, %v3574_v4  ;;  %v698_v30 = vrot.slane %v682_v23, %v3574_v4 }
 0x1f0   :  { %v804_v31 = vrot.slane %v705_v24, %v3574_v4  ;;  %v818_v62 = vrot.slane %v712_v26, %v3574_v4  ;;  %v736_v32 = vcombine.low %v665_v28, %v634_v25  ;;  %v737_v33 = vcombine.high %v665_v28, %v634_v25 }
 0x1f1   :  { %v557_v6 = vpop.permute.xlu0 %556  ;;  %v797_v39 = vrot.slane %v691_v29, %v3574_v4  ;;  %v811_v40 = vrot.slane %v698_v30, %v3574_v4 }
 0x1f2   :  { %v653_v37 = vsel %vm146_vm8, %v510_v56, %v557_v6  ;;  %v821_v42 = vcombine.low %v804_v31, %v818_v62  ;;  %v758_v43 = vrot.slane %v736_v32, %v3574_v4  ;;  %v765_v44 = vrot.slane %v737_v33, %v3574_v4  ;;  %v555_v17 = vpop.permute.xlu1 %554  ;;  %v3132_v33 = vld [vmem:[#allocation5 + $0x128] sm:$0xff]  }
 0x1f3   :  { %v734_v59 = vcombine.low %v641_v34, %v653_v37  ;;  %v735_v22 = vcombine.high %v641_v34, %v653_v37  ;;  %v650_v45 = vsel %vm146_vm8, %v506_v1, %v555_v17  ;;  %v820_v48 = vcombine.high %v797_v39, %v811_v40  ;;  %v3133_v6 = vld [vmem:[#allocation5 + $0x1a8] sm:$0xff]   ;;  %2893 = vmatprep.subr.bf16.mxu1 %v3132_v33 }
 0x1f4   :  { %v822_v51 = vcombine.high %v804_v31, %v818_v62  ;;  %v819_v53 = vcombine.low %v797_v39, %v811_v40  ;;  %v3134_v34 = vld [vmem:[#allocation5 + $0xe8] sm:$0xff]   ;;  %v3136_v39 = vld [vmem:[#allocation5 + $0x130] sm:$0xff]   ;;  %2915 = vmatprep.subr.bf16.mxu0 %v3133_v6 }
 0x1f5   :  { %v744_v8 = vrot.slane %v734_v59, %v3574_v4  ;;  %v493_v52 = vpop.permute.xlu0 %492  ;;  %v751_v54 = vrot.slane %v735_v22, %v3574_v4  ;;  %1095 = vmatprep.mubr.bf16.mxu1 %v820_v48  ;;  %v3135_v37 = vld [vmem:[#allocation5 + $0x168] sm:$0xff]   ;;  %v3137_v40 = vld [vmem:[#allocation5 + $0x1b0] sm:$0xff]   ;;  %v3140_v22 = vld [vmem:[#allocation5 + $0x138] sm:$0xff]  }
 0x1f6   :  { %v639_v20 = vsel %vm146_vm8, %v3130_v47, %v493_v52  ;;  %2751 = vmatprep.mubr.msk.bf16.mxu0 %vm146_vm8, %v822_v51  ;;  %1096 = vmatmul.mubr.bf16.vlgmr.msra.gmra.mrb[0].mxu1 %v819_v53  ;;  %v497_v56 = vpop.permute.xlu1 %496 }
 0x1f7   :  { %v767_v55 = vcombine.high %v744_v8, %v758_v43  ;;  %v717_v3 = vcombine.low %v639_v20, %v650_v45  ;;  %1152 = vmatmul.mubr.bf16.vlgmr.msra.gmra.mrb[12].mxu0 %v821_v42  ;;  %v768_v1 = vcombine.low %v751_v54, %v765_v44  ;;  %v769_v25 = vcombine.high %v751_v54, %v765_v44  ;;  %v3141_v45 = vld [vmem:[#allocation5 + $0x1b8] sm:$0xff]  }
 0x1f8   :  { %v644_v19 = vsel %vm146_vm8, %v3131_v11, %v497_v56  ;;  %2894 = vmatpush3.bf16.msra.mxu1 %v3134_v34  ;;  %2916 = vmatpush3.bf16.msra.mxu0 %v3135_v37  ;;  %v3142_v20 = vld [vmem:[#allocation5 + $0xf8] sm:$0xff]   ;;  %v3145_v56 = vld [vmem:[#allocation5 + $0x1c0] sm:$0xff]  }
 0x1f9   :  { %v725_v21 = vrot.slane %v717_v3, %v3574_v4  ;;  %v617_v57 = vpop.permute.xlu0 %616  ;;  %v2719_v38 = vcombine.low %v767_v55, %v751_v54  ;;  %v2720_v58 = vcombine.high %v758_v43, %v768_v1  ;;  %2895 = vmatprep.subr.bf16.mxu1 %v3136_v39  ;;  %2917 = vmatprep.subr.bf16.mxu0 %v3137_v40  ;;  %v3143_v55 = vld [vmem:[#allocation5 + $0x178] sm:$0xff]   ;;  %v3144_v3 = vld [vmem:[#allocation5 + $0x140] sm:$0xff]  }
 0x1fa   :  { %v662_v60 = vsel %vm146_vm8, %v568_v36, %v617_v57  ;;  %v621_v10 = vpop.permute.xlu1 %620  ;;  %v3147_v57 = vld [vmem:[#allocation5 + $0x180] sm:$0xff]  }
 0x1fb   :  { %v2717_v61 = vcombine.low %v725_v21, %v744_v8  ;;  %v718_v7 = vcombine.low %v662_v60, %v630_v41  ;;  %v668_v46 = vsel %vm146_vm8, %v571_v50, %v621_v10  ;;  %v847_v36 = vrot.slane %v2719_v38, %v3574_v4  ;;  %v3146_v21 = vld [vmem:[#allocation5 + $0x100] sm:$0xff]   ;;  %v3148_v38 = vld [vmem:[#allocation5 + $0x148] sm:$0xff]  }
 0x1fc   :  { %v771_v14 = vcombine.low %v668_v46, %v633_v5  ;;  %v854_v26 = vrot.slane %v2720_v58, %v3574_v4  ;;  %v3149_v58 = vld [vmem:[#allocation5 + $0x1c8] sm:$0xff]   ;;  %v3162_v39 = vld [vmem:[#allocation5 + $0x120] sm:$0xff]  }
 0x1fd   :  { %v732_v12 = vrot.slane %v718_v7, %v3574_v4  ;;  %v559_v15 = vpop.permute.xlu0 %558  ;;  %v833_v16 = vrot.slane %v2717_v61, %v3574_v4  ;;  %v3150_v7 = vld [vmem:[#allocation5 + $0x108] sm:$0xff]   ;;  %v3163_v40 = vld [vmem:[#allocation5 + $0x1a0] sm:$0xff]  }
 0x1fe   :  { %v656_v13 = vsel %vm146_vm8, %v509_v63, %v559_v15  ;;  %v785_v9 = vrot.slane %v771_v14, %v3574_v4  ;;  %v3151_v10 = vld [vmem:[#allocation5 + $0x188] sm:$0xff]   ;;  %v3153_v14 = vld [vmem:[#allocation5 + $0x1d0] sm:$0xff]  }
 0x1ff   :  { %v2718_v41 = vcombine.low %v732_v12, %v758_v43  ;;  %v770_v50 = vcombine.low %v644_v19, %v656_v13  ;;  %v856_v23 = vcombine.high %v833_v16, %v847_v36  ;;  %v855_v24 = vcombine.low %v833_v16, %v847_v36  ;;  %v3152_v12 = vld [vmem:[#allocation5 + $0x150] sm:$0xff]  }
 0x201   :  { %v840_v49 = vrot.slane %v2718_v41, %v3574_v4  ;;  %v778_v5 = vrot.slane %v770_v50, %v3574_v4  ;;  %1103 = vmatprep.mubr.bf16.mxu1 %v856_v23  ;;  %v3154_v41 = vld [vmem:[#allocation5 + $0x110] sm:$0xff]   ;;  %v3156_v23 = vld [vmem:[#allocation5 + $0x158] sm:$0xff]  }
 0x202   :  { %1104 = vmatmul.mubr.bf16.gmra.mrb[4].mxu1 %v855_v24  ;;  %v3157_v24 = vld [vmem:[#allocation5 + $0x1d8] sm:$0xff]  }
 0x203   :  { %v786_v27 = vcombine.low %v778_v5, %v785_v9  ;;  %v2721_v28 = vcombine.low %v769_v25, %v778_v5  ;;  %v858_v29 = vcombine.high %v840_v49, %v854_v26  ;;  %v857_v18 = vcombine.low %v840_v49, %v854_v26  ;;  %v3155_v9 = vld [vmem:[#allocation5 + $0x190] sm:$0xff]  }
 0x205   :  { %v2722_v30 = vcombine.high %v765_v44, %v786_v27  ;;  %2752 = vmatprep.mubr.msk.bf16.mxu0 %vm146_vm8, %v858_v29  ;;  %v867_v63 = vrot.slane %v2721_v28, %v3574_v4  ;;  %v3138_v44 = vld [vmem:[#allocation5 + $0xf0] sm:$0xff]  }
 0x206   :  { %1160 = vmatmul.mubr.bf16.gmra.mrb[16].mxu0 %v857_v18  ;;  %2896 = vmatpush3.bf16.msra.mxu1 %v3138_v44  ;;  %v3158_v18 = vld [vmem:[#allocation5 + $0x118] sm:$0xff]  }
 0x207   :  { %v875_v31 = vcombine.high %v867_v63, %v867_v63  ;;  %v874_v62 = vrot.slane %v2722_v30, %v3574_v4  ;;  %v3139_v4 = vld [vmem:[#allocation5 + $0x170] sm:$0xff]   ;;  %2897 = vmatprep.subr.bf16.mxu1 %v3140_v22  ;;  %v3159_v30 = vld [vmem:[#allocation5 + $0x198] sm:$0xff]  }
 0x208   :  { %2918 = vmatpush3.bf16.msra.mxu0 %v3139_v4 }
 0x209   :  { %1111 = vmatprep.mubr.bf16.mxu1 %v875_v31  ;;  %v876_v32 = vcombine.high %v874_v62, %v874_v62  ;;  %2919 = vmatprep.subr.bf16.mxu0 %v3141_v45 }
 0x20a   :  { %1112 = vmatmul.mubr.bf16.gmra.mrb[8].mxu1 %v867_v63 }
 0x20b   :  { %2753 = vmatprep.mubr.msk.bf16.mxu0 %vm146_vm8, %v876_v32  ;;  %2898 = vmatpush3.bf16.msra.mxu1 %v3142_v20  ;;  %v3161_v32 = vld [vmem:[#allocation5 + $0x1e0] sm:$0xff]  }
 0x20c   :  { %2920 = vmatpush3.bf16.msra.mxu0 %v3143_v55  ;;  %2899 = vmatprep.subr.bf16.mxu1 %v3144_v3 }
 0x20d   :  { %2921 = vmatprep.subr.bf16.mxu0 %v3145_v56 }
 0x20e   :  { %1168 = vmatmul.mubr.bf16.gmra.mrb[20].mxu0 %v874_v62  ;;  %v3160_v62 = vld [vmem:[#allocation5 + $0x160] sm:$0xff]  }
 0x20f   :  { %2900 = vmatpush3.bf16.msra.mxu1 %v3146_v21 }
 0x210   :  { %2922 = vmatpush3.bf16.msra.mxu0 %v3147_v57  ;;  %2901 = vmatprep.subr.bf16.mxu1 %v3148_v38 }
 0x211   :  { %2923 = vmatprep.subr.bf16.mxu0 %v3149_v58 }
 0x213   :  { %2902 = vmatpush3.bf16.msra.mxu1 %v3150_v7 }
 0x214   :  { %2924 = vmatpush3.bf16.msra.mxu0 %v3151_v10  ;;  %2903 = vmatprep.subr.bf16.mxu1 %v3152_v12 }
 0x215   :  { %2925 = vmatprep.subr.bf16.mxu0 %v3153_v14 }
 0x217   :  { %2904 = vmatpush3.bf16.msra.mxu1 %v3154_v41  ;;  %v2755_v41 = vld [vmem:[#allocation8 + $0x3] ss:$0 sm:$0xff] }
 0x218   :  { %2926 = vmatpush3.bf16.msra.mxu0 %v3155_v9  ;;  %2905 = vmatprep.subr.bf16.mxu1 %v3156_v23 }
 0x219   :  { %2927 = vmatprep.subr.bf16.mxu0 %v3157_v24 }
 0x21b   :  { %2906 = vmatpush3.bf16.msra.mxu1 %v3158_v18 }
 0x21c   :  { %2928 = vmatpush3.bf16.msra.mxu0 %v3159_v30  ;;  %2907 = vmatprep.subr.bf16.mxu1 %v3160_v62 }
 0x21d   :  { %2929 = vmatprep.subr.bf16.mxu0 %v3161_v32 }
 0x21f   :  { %2908 = vmatpush3.bf16.msra.mxu1 %v3162_v39 }
 0x220   :  { %2930 = vmatpush3.bf16.msra.mxu0 %v3163_v40 }
 0x221   :  { %2999 = vmatprep.subr.bf16.mxu0 %v3280_v0 }
 0x2c9   :  { %v2875_v42 = vpop.f32.mrb[0].mxu1 }
 0x2ca   :  { %v1153_v43 = vpop.f32.mrb[12].mxu0  ;;  %v2876_v59 = vpop.f32.mrb[1].mxu1 }
 0x2cb   :  { %v1155_v17 = vpop.f32.mrb[13].mxu0  ;;  %v2877_v47 = vadd.f32 %v2876_v59, %v2875_v42  ;;  %v2878_v48 = vpop.f32.mrb[2].mxu1 }
 0x2cc   :  { %v1156_v51 = vpop.f32.mrb[14].mxu0  ;;  %v2879_v8 = vpop.f32.mrb[3].mxu1 }
 0x2cd   :  { %v1158_v52 = vpop.f32.mrb[15].mxu0  ;;  %v3625_v53 = vadd.f32 %v2877_v47, %v1153_v43  ;;  %v2880_v54 = vadd.f32 %v2879_v8, %v2878_v48  ;;  %v3172_v48 = vld [vmem:[#allocation5 + $0x228] sm:$0xff]  }
 0x2ce   :  { %2937 = vmatprep.subr.bf16.mxu1 %v3172_v48 }
 0x2cf   :  { %v3627_v1 = vadd.f32 %v2880_v54, %v1156_v51 }
 0x2d1   :  { %v1177_v25 = vadd.f32 %v3627_v1, %v3625_v53 }
 0x2d5   :  { %v2881_v60 = vpop.f32.mrb[4].mxu1 }
 0x2d6   :  { %v2882_v61 = vpop.f32.mrb[5].mxu1 }
 0x2d7   :  { %v2883_v11 = vadd.f32 %v2882_v61, %v2881_v60  ;;  %v2884_v46 = vpop.f32.mrb[6].mxu1 }
 0x2d8   :  { %v2885_v15 = vpop.f32.mrb[7].mxu1 }
 0x2d9   :  { %v2886_v16 = vadd.f32 %v2885_v15, %v2884_v46  ;;  %v1161_v36 = vpop.f32.mrb[16].mxu0  ;;  %v2754_v15 = vld [vmem:[#allocation8 + $0x2] ss:$0 sm:$0xff] }
 0x2da   :  { %v1162_v19 = vadd.f32 %v2883_v11, %v1161_v36  ;;  %v1163_v13 = vpop.f32.mrb[17].mxu0 }
 0x2db   :  { %v1164_v50 = vpop.f32.mrb[18].mxu0 }
 0x2dc   :  { %v1178_v49 = vadd.f32 %v1177_v25, %v1162_v19  ;;  %v1165_v5 = vadd.f32 %v2886_v16, %v1164_v50  ;;  %v1166_v26 = vpop.f32.mrb[19].mxu0 }
 0x2dd   :  { %v2887_v27 = vpop.f32.mrb[8].mxu1 }
 0x2de   :  { %v1179_v28 = vadd.f32 %v1178_v49, %v1165_v5  ;;  %v2888_v29 = vpop.f32.mrb[9].mxu1 }
 0x2df   :  { %v2889_v63 = vadd.f32 %v2888_v29, %v2887_v27  ;;  %v2890_v31 = vpop.f32.mrb[10].mxu1 }
 0x2e0   :  { %v2891_v33 = vpop.f32.mrb[11].mxu1 }
 0x2e1   :  { %v1169_v6 = vpop.f32.mrb[20].mxu0 }
 0x2e2   :  { %v1170_v34 = vadd.f32 %v2889_v63, %v1169_v6  ;;  %v1171_v37 = vpop.f32.mrb[21].mxu0 }
 0x2e3   :  { %v1172_v42 = vpop.f32.mrb[22].mxu0 }
 0x2e4   :  { %v1180_v43 = vadd.f32 %v1179_v28, %v1170_v34  ;;  %v1173_v44 = vpop.f32.mrb[23].mxu0 }
 0x2e6   :  { %v1181_v4 = vrot.slane %v1180_v43, 4 }
 0x2e8   :  { %v1182_v59 = vadd.f32 %v1181_v4, %v1180_v43 }
 0x2ea   :  { %v1183_v17 = vrot.slane %v1182_v59, 2 }
 0x2ec   :  { %v1184_v22 = vadd.f32 %v1183_v17, %v1182_v59 }
 0x2ee   :  { %v1185_v45 = vrot.slane %v1184_v22, 1 }
 0x2f0   :  { %v1186_v47 = vadd.f32 %v1185_v45, %v1184_v22 }
 0x2f2   :  { %v1187_v51 = vmul.f32 0.025, %v1186_v47 }
 0x2f4   :  { %v1188_v8 = vsub.f32 %v3625_v53, %v1187_v51  ;;  %v1189_v52 = vsub.f32 %v3627_v1, %v1187_v51  ;;  %v1190_v54 = vsub.f32 %v1162_v19, %v1187_v51  ;;  %v1191_v20 = vsub.f32 %v1165_v5, %v1187_v51 }
 0x2f5   :  { %v1192_v55 = vsub.f32 %v1170_v34, %v1187_v51 }
 0x2f6   :  { %v1193_v3 = vmul.f32 %v1188_v8, %v1188_v8  ;;  %v1194_v56 = vmul.f32 %v1189_v52, %v1189_v52  ;;  %v1195_v25 = vmul.f32 %v1190_v54, %v1190_v54  ;;  %v1196_v57 = vmul.f32 %v1191_v20, %v1191_v20 }
 0x2f7   :  { %v1197_v58 = vmul.f32 %v1192_v55, %v1192_v55 }
 0x2f8   :  { %v1198_v21 = vadd.f32 %v1194_v56, %v1193_v3 }
 0x2fa   :  { %v1199_v38 = vadd.f32 %v1198_v21, %v1195_v25 }
 0x2fc   :  { %v1200_v60 = vadd.f32 %v1199_v38, %v1196_v57 }
 0x2fe   :  { %v1201_v61 = vadd.f32 %v1200_v60, %v1197_v58 }
 0x300   :  { %v1202_v7 = vrot.slane %v1201_v61, 4 }
 0x302   :  { %v1203_v10 = vadd.f32 %v1202_v7, %v1201_v61 }
 0x304   :  { %v1204_v11 = vrot.slane %v1203_v10, 2 }
 0x306   :  { %v1205_v46 = vadd.f32 %v1204_v11, %v1203_v10 }
 0x308   :  { %v1206_v12 = vrot.slane %v1205_v46, 1 }
 0x30a   :  { %v1207_v53 = vadd.f32 %v1206_v12, %v1205_v46 }
 0x30c   :  { %v1208_v14 = vmul.f32 0.025, %v1207_v53 }
 0x30e   :  { %3198 = vrsqrt.f32 %v1208_v14 }
 0x318   :  { %v3199_v1 = vpop.eup %3198 }
 0x319   :  { %v1210_v16 = vmul.f32 %v3199_v1, %v1188_v8  ;;  %v1211_v36 = vmul.f32 %v3199_v1, %v1189_v52  ;;  %v1212_v19 = vmul.f32 %v3199_v1, %v1190_v54  ;;  %v1213_v13 = vmul.f32 %v3199_v1, %v1191_v20 }
 0x31a   :  { %v1214_v9 = vmul.f32 %v3199_v1, %v1192_v55 }
 0x31b   :  { %v1219_v50 = vmul.f32 %v2754_v15, %v1210_v16  ;;  %v1220_v23 = vmul.f32 %v2754_v15, %v1211_v36  ;;  %v1221_v24 = vmul.f32 %v2754_v15, %v1212_v19  ;;  %v1222_v49 = vmul.f32 %v2754_v15, %v1213_v13 }
 0x31c   :  { %v1223_v5 = vmul.f32 %v2754_v15, %v1214_v9 }
 0x31d   :  { %v1228_v26 = vadd.f32 %v2755_v41, %v1219_v50  ;;  %v1229_v27 = vadd.f32 %v2755_v41, %v1220_v23  ;;  %v1230_v28 = vadd.f32 %v2755_v41, %v1221_v24  ;;  %v1231_v29 = vadd.f32 %v2755_v41, %v1222_v49 }
 0x31e   :  { %v1232_v18 = vadd.f32 %v2755_v41, %v1223_v5 }
 0x31f   :  { %vm1233_vm1 = vcmp.gt.f32.partialorder %v1228_v26, 0.0  ;;  %vm1234_vm8 = vcmp.gt.f32.partialorder %v1229_v27, 0.0  ;;  %vm1235_vm14 = vcmp.gt.f32.partialorder %v1230_v28, 0.0  ;;  %vm1236_vm15 = vcmp.gt.f32.partialorder %v1231_v29, 0.0 }
 0x320   :  { %vm1237_vm6 = vcmp.gt.f32.partialorder %v1232_v18, 0.0  ;;  %v1238_v30 = vmul.f32 %v1228_v26, %v3404_v35  ;;  %v1239_v63 = vmul.f32 %v1229_v27, %v3404_v35  ;;  %v1240_v31 = vmul.f32 %v1230_v28, %v3404_v35 }
 0x321   :  { %v1241_v62 = vmul.f32 %v1231_v29, %v3404_v35  ;;  %v1242_v32 = vmul.f32 %v1232_v18, %v3404_v35 }
 0x322   :  { %v1243_v33 = vsel %vm1233_vm1, %v1228_v26, %v1238_v30  ;;  %v1244_v6 = vsel %vm1234_vm8, %v1229_v27, %v1239_v63  ;;  %v1245_v34 = vsel %vm1235_vm14, %v1230_v28, %v1240_v31 }
 0x323   :  { %v1246_v37 = vsel %vm1236_vm15, %v1231_v29, %v1241_v62  ;;  %v3639_v39 = vsel %vm1237_vm6, %v1232_v18, %v1242_v32  ;;  %v1253_v40 = vcombine.high %v1243_v33, %v1243_v33  ;;  %v1254_v42 = vcombine.high %v1244_v6, %v1244_v6 }
 0x324   :  { %v1255_v43 = vcombine.high %v1245_v34, %v1245_v34  ;;  %v1256_v44 = vcombine.high %v1246_v37, %v1246_v37  ;;  %v1257_v4 = vcombine.high %v3639_v39, %v3639_v39  ;;  %v1264_v59 = vsel %vm1263_vm7, %v1243_v33, -inf }
 0x325   :  { %v1265_v17 = vrot.slane %v1264_v59, 4  ;;  %v1271_v22 = vsel %vm1263_vm7, %v1253_v40, -inf  ;;  %v1278_v45 = vsel %vm1263_vm7, %v1244_v6, -inf  ;;  %v1285_v47 = vsel %vm1263_vm7, %v1254_v42, -inf }
 0x326   :  { %v1272_v48 = vrot.slane %v1271_v22, 4  ;;  %v1279_v51 = vrot.slane %v1278_v45, 4  ;;  %v1286_v8 = vrot.slane %v1285_v47, 4  ;;  %v1292_v52 = vsel %vm1263_vm7, %v1245_v34, -inf }
 0x327   :  { %v1266_v54 = vmax.f32 %v1264_v59, %v1265_v17  ;;  %v1293_v20 = vrot.slane %v1292_v52, 4  ;;  %v1299_v55 = vsel %vm1263_vm7, %v1255_v43, -inf  ;;  %v1306_v3 = vsel %vm1263_vm7, %v1246_v37, -inf }
 0x328   :  { %v1273_v56 = vmax.f32 %v1271_v22, %v1272_v48  ;;  %v1280_v25 = vmax.f32 %v1278_v45, %v1279_v51  ;;  %v1287_v21 = vmax.f32 %v1285_v47, %v1286_v8  ;;  %v1300_v57 = vrot.slane %v1299_v55, 4 }
 0x329   :  { %v1267_v38 = vrot.slane %v1266_v54, 2  ;;  %v1294_v58 = vmax.f32 %v1292_v52, %v1293_v20  ;;  %v1307_v60 = vrot.slane %v1306_v3, 4  ;;  %v1313_v61 = vsel %vm1263_vm7, %v1256_v44, -inf }
 0x32a   :  { %v1274_v7 = vrot.slane %v1273_v56, 2  ;;  %v1281_v10 = vrot.slane %v1280_v25, 2  ;;  %v1288_v11 = vrot.slane %v1287_v21, 2  ;;  %v1301_v46 = vmax.f32 %v1299_v55, %v1300_v57 }
 0x32b   :  { %v1268_v12 = vmax.f32 %v1266_v54, %v1267_v38  ;;  %v1295_v53 = vrot.slane %v1294_v58, 2  ;;  %v1308_v14 = vmax.f32 %v1306_v3, %v1307_v60  ;;  %v1314_v1 = vrot.slane %v1313_v61, 4 }
 0x32c   :  { %v1275_v15 = vmax.f32 %v1273_v56, %v1274_v7  ;;  %v1282_v16 = vmax.f32 %v1280_v25, %v1281_v10  ;;  %v1289_v36 = vmax.f32 %v1287_v21, %v1288_v11  ;;  %v1302_v19 = vrot.slane %v1301_v46, 2 }
 0x32d   :  { %v1269_v13 = vrot.slane %v1268_v12, 1  ;;  %v1296_v41 = vmax.f32 %v1294_v58, %v1295_v53  ;;  %v1309_v9 = vrot.slane %v1308_v14, 2  ;;  %v1315_v50 = vmax.f32 %v1313_v61, %v1314_v1 }
 0x32e   :  { %v1276_v23 = vrot.slane %v1275_v15, 1  ;;  %v1283_v24 = vrot.slane %v1282_v16, 1  ;;  %v1290_v49 = vrot.slane %v1289_v36, 1  ;;  %v1303_v5 = vmax.f32 %v1301_v46, %v1302_v19 }
 0x32f   :  { %v1270_v26 = vmax.f32 %v1268_v12, %v1269_v13  ;;  %v1297_v27 = vrot.slane %v1296_v41, 1  ;;  %v1310_v28 = vmax.f32 %v1308_v14, %v1309_v9  ;;  %v1316_v29 = vrot.slane %v1315_v50, 2 }
 0x330   :  { %v1277_v18 = vmax.f32 %v1275_v15, %v1276_v23  ;;  %v1284_v30 = vmax.f32 %v1282_v16, %v1283_v24  ;;  %v1291_v63 = vmax.f32 %v1289_v36, %v1290_v49  ;;  %v1304_v31 = vrot.slane %v1303_v5, 1  ;;  %v1524_v16 = vld [vmem:[#allocation3] sm:$0xe] }
 0x331   :  { %v1298_v62 = vmax.f32 %v1296_v41, %v1297_v27  ;;  %v1311_v32 = vrot.slane %v1310_v28, 1  ;;  %v1317_v33 = vmax.f32 %v1315_v50, %v1316_v29  ;;  %v1320_v6 = vsel %vm1263_vm7, %v3639_v39, -inf }
 0x332   :  { %v1305_v34 = vmax.f32 %v1303_v5, %v1304_v31  ;;  %v1321_v37 = vrot.slane %v1320_v6, 4  ;;  %v1327_v40 = vsel %vm1263_vm7, %v1257_v4, -inf  ;;  %v2845_v42 = vpack.c.bf16 %v1270_v26, %v1270_v26  ;;  %v1527_v26 = vld [vmem:[#allocation3 + $0x8] sm:$0xe] }
 0x333   :  { %v1312_v43 = vmax.f32 %v1310_v28, %v1311_v32  ;;  %v1318_v44 = vrot.slane %v1317_v33, 1  ;;  %v1328_v59 = vrot.slane %v1327_v40, 4  ;;  %v2846_v17 = vpack.c.bf16 %v1277_v18, %v1277_v18 }
 0x334   :  { %v1322_v22 = vmax.f32 %v1320_v6, %v1321_v37  ;;  %v2847_v45 = vpack.c.bf16 %v1284_v30, %v1284_v30  ;;  %v2848_v47 = vpack.c.bf16 %v1291_v63, %v1291_v63  ;;  %v2849_v48 = vpack.c.bf16 %v1298_v62, %v1298_v62  ;;  %v3166_v30 = vld [vmem:[#allocation3] ss:$0 sps:$4 sm:$0xee]  }
 0x335   :  { %v1319_v51 = vmax.f32 %v1317_v33, %v1318_v44  ;;  %v1329_v8 = vmax.f32 %v1327_v40, %v1328_v59  ;;  %v2850_v52 = vpack.c.bf16 %v1305_v34, %v1305_v34  ;;  %v2851_v54 = vpack.c.bf16 %v1312_v43, %v1312_v43 }
 0x336   :  { %v1323_v20 = vrot.slane %v1322_v22, 2  ;;  %v1496_v55 = vunpack.c.l.b16 %v2845_v42  ;;  %v1497_v39 = vunpack.c.l.b16 %v2846_v17  ;;  %v1498_v4 = vunpack.c.l.b16 %v2847_v45 }
 0x337   :  { %v1330_v3 = vrot.slane %v1329_v8, 2  ;;  %v2852_v56 = vpack.c.bf16 %v1319_v51, %v1319_v51  ;;  %v1499_v25 = vunpack.c.l.b16 %v2848_v47  ;;  %v1501_v57 = vunpack.c.l.b16 %v2850_v52 }
 0x338   :  { %v1324_v21 = vmax.f32 %v1322_v22, %v1323_v20  ;;  %v1502_v38 = vunpack.c.l.b16 %v2851_v54  ;;  %v1507_v58 = vsel %vm1506_vm9, %v1497_v39, %v1496_v55  ;;  %v1500_v61 = vunpack.c.l.b16 %v2849_v48  ;;  %v3167_v20 = vld [vmem:[#allocation3 + $0x8] ss:$0 sps:$4 sm:$0xee]  }
 0x339   :  { %v1331_v60 = vmax.f32 %v1329_v8, %v1330_v3  ;;  %v1503_v7 = vunpack.c.l.b16 %v2852_v56  ;;  %v1509_v10 = vsel %vm1508_vm10, %v1498_v4, %v1507_v58  ;;  %v3284_v63 = vmov 1966171168  }
 0x33a   :  { %v1325_v11 = vrot.slane %v1324_v21, 1  ;;  %v1511_v46 = vsel %vm1510_vm4, %v1499_v25, %v1509_v10  ;;  %v1514_v12 = vsel %vm1506_vm9, %v1502_v38, %v1501_v57  ;;  %v1630_v31 = vunpack.c.l.s4 %v3284_v63 }
 0x33b   :  { %v1332_v14 = vrot.slane %v1331_v60, 1  ;;  %v1513_v1 = vsel %vm1512_vm11, %v1500_v61, %v1511_v46  ;;  %v1515_v15 = vsel %vm1508_vm10, %v1503_v7, %v1514_v12  ;;  %v1571_v33 = vshrl.u32 %v3166_v30, 16 }
 0x33c   :  { %v1326_v36 = vmax.f32 %v1324_v21, %v1325_v11  ;;  %v1518_v19 = vpack.c.b16 %v1513_v1, %v1513_v1  ;;  %v1574_v6 = vshll.u32 %v3166_v30, 16  ;;  %v1631_v44 = vunpack.c.0.s8 %v1630_v31 }
 0x33d   :  { %v1333_v13 = vmax.f32 %v1331_v60, %v1332_v14  ;;  %v1573_v43 = vrot.slane %v1571_v33, 1  ;;  %v1568_v47 = vrot.slane %v3166_v30, 1  ;;  %v1579_v21 = vshrl.u32 %v3167_v20, 16 }
 0x33e   :  { %v2853_v41 = vpack.c.bf16 %v1326_v36, %v1326_v36  ;;  %v1525_v9 = vsel %vm3660_vm12, %v1518_v19, %v1524_v16  ;;  %v1576_v59 = vrot.slane %v1574_v6, 2  ;;  %v3673_v3 = vsub.s32 %v1631_v44, %v3571_v2 }
 0x33f   :  { %v2854_v50 = vpack.c.bf16 %v1333_v13, %v1333_v13  ;;  %1526 = vst [vmem:[#allocation3] sm:$0xe] %v1525_v9  ;;  %v1582_v58 = vshll.u32 %v3167_v20, 16  ;;  %v1581_v46 = vrot.slane %v1579_v21, 1  ;;  %v1569_v16 = vrot.slane %v3167_v20, 1 }
 0x340   :  { %v1504_v23 = vunpack.c.l.b16 %v2853_v41  ;;  %v1577_v8 = vor.u32 %v1576_v59, %v1573_v43 }
 0x341   :  { %v1505_v24 = vunpack.c.l.b16 %v2854_v50  ;;  %v1584_v53 = vrot.slane %v1582_v58, 2 }
 0x342   :  { %v1516_v49 = vsel %vm1510_vm4, %v1504_v23, %v1515_v15  ;;  %v1627_v4 = vcombine.low %v1568_v47, %v1577_v8 }
 0x343   :  { %v1517_v5 = vsel %vm1512_vm11, %v1505_v24, %v1516_v49  ;;  %v1585_v13 = vor.u32 %v1584_v53, %v1581_v46 }
 0x344   :  { %v1519_v27 = vpack.c.b16 %v1517_v5, %v1517_v5  ;;  %v1642_v2 = vrot.slane %v1627_v4, %v3673_v3 }
 0x345   :  { %v1693_v5 = vcombine.low %v1569_v16, %v1585_v13 }
 0x346   :  { %v1528_v28 = vsel %vm3660_vm12, %v1519_v27, %v1527_v26  ;;  %v1530_v29 = vld [vmem:[#allocation3] sm:$0x7]  ;;  %v3170_v48 = vld [vmem:[#allocation3] sm:$0x38]  }
 0x347   :  { %1529 = vst [vmem:[#allocation3 + $0x8] sm:$0xe] %v1528_v28  ;;  %v2766_v18 = vcombine.low %v1530_v29, %v1530_v29  ;;  %v3168_v62 = vld [vmem:[#allocation3] sm:$0x1c]   ;;  %v1624_v57 = vrot.slane %v3170_v48, 3  ;;  %v1708_v28 = vrot.slane %v1693_v5, %v3673_v3  ;;  %v3178_v5 = vld [vmem:[#allocation5 + $0x238] sm:$0xff]  }
 0x348   :  { %v1599_v34 = vshrl.u32 %v3168_v62, 16  ;;  %v1602_v37 = vshll.u32 %v3168_v62, 16  ;;  %v1596_v55 = vrot.slane %v3168_v62, 2 }
 0x349   :  { %v1551_v32 = vshll.u32 %v2766_v18, 16  ;;  %v1549_v40 = vshrl.u32 %v2766_v18, 16  ;;  %v1656_v19 = vrot.slane %v1624_v57, %v3673_v3 }
 0x34a   :  { %v1601_v17 = vrot.slane %v1599_v34, 2  ;;  %v1604_v22 = vrot.slane %v1602_v37, 3 }
 0x34b   :  { %v1553_v42 = vrot.slane %v1551_v32, 1 }
 0x34c   :  { %v1605_v52 = vor.u32 %v1604_v22, %v1601_v17 }
 0x34d   :  { %v1554_v45 = vor.u32 %v1553_v42, %v1549_v40 }
 0x34e   :  { %v1531_v51 = vld [vmem:[#allocation3 + $0x8] sm:$0x7]  ;;  %v1628_v38 = vcombine.low %v1596_v55, %v1605_v52  ;;  %v3171_v7 = vld [vmem:[#allocation3 + $0x8] sm:$0x38]  }
 0x34f   :  { %v2767_v54 = vcombine.low %v1531_v51, %v1531_v51  ;;  %v1626_v39 = vcombine.low %v1530_v29, %v1554_v45  ;;  %v3169_v56 = vld [vmem:[#allocation3 + $0x8] sm:$0x1c]   ;;  %v1625_v50 = vrot.slane %v3171_v7, 3 }
 0x350   :  { %v1607_v60 = vshrl.u32 %v3169_v56, 16  ;;  %v1610_v61 = vshll.u32 %v3169_v56, 16  ;;  %v1649_v36 = vrot.slane %v1628_v38, %v3673_v3  ;;  %v1597_v41 = vrot.slane %v3169_v56, 2 }
 0x351   :  { %v1558_v25 = vshll.u32 %v2767_v54, 16  ;;  %v1556_v10 = vshrl.u32 %v2767_v54, 16  ;;  %v1635_v12 = vrot.slane %v1626_v39, %v3673_v3  ;;  %v1722_v18 = vrot.slane %v1625_v50, %v3673_v3  ;;  %v3175_v50 = vld [vmem:[#allocation5 + $0x230] sm:$0xff]  }
 0x352   :  { %v1609_v14 = vrot.slane %v1607_v60, 2  ;;  %v1612_v1 = vrot.slane %v1610_v61, 3  ;;  %v1659_v24 = vcombine.low %v1649_v36, %v1656_v19  ;;  %v1660_v62 = vcombine.high %v1649_v36, %v1656_v19 }
 0x353   :  { %v1560_v11 = vrot.slane %v1558_v25, 1  ;;  %v1657_v23 = vcombine.low %v1635_v12, %v1642_v2  ;;  %v1658_v30 = vcombine.high %v1635_v12, %v1642_v2 }
 0x354   :  { %v1613_v9 = vor.u32 %v1612_v1, %v1609_v14  ;;  %v1681_v31 = vrot.slane %v1659_v24, %v3673_v3  ;;  %v1688_v45 = vrot.slane %v1660_v62, %v3673_v3  ;;  %v3176_v24 = vld [vmem:[#allocation5 + $0x1f0] sm:$0xff]  }
 0x355   :  { %v1561_v15 = vor.u32 %v1560_v11, %v1556_v10  ;;  %v1667_v63 = vrot.slane %v1657_v23, %v3673_v3  ;;  %v1674_v44 = vrot.slane %v1658_v30, %v3673_v3  ;;  %v3184_v30 = vld [vmem:[#allocation5 + $0x248] sm:$0xff]   ;;  %v3187_v62 = vld [vmem:[#allocation5 + $0x250] sm:$0xff]  }
 0x356   :  { %v1694_v26 = vcombine.low %v1597_v41, %v1613_v9  ;;  %v2778_v55 = vcombine.low %v1681_v31, %v1688_v45  ;;  %v3173_v41 = vld [vmem:[#allocation5 + $0x1e8] sm:$0xff]  }
 0x357   :  { %v1692_v49 = vcombine.low %v1531_v51, %v1561_v15  ;;  %v1690_v59 = vcombine.high %v1667_v63, %v1681_v31  ;;  %v2777_v8 = vcombine.low %v1667_v63, %v1674_v44  ;;  %v3174_v9 = vld [vmem:[#allocation5 + $0x268] sm:$0xff]   ;;  %v3195_v44 = vld [vmem:[#allocation5 + $0x2a0] sm:$0xff]  }
 0x358   :  { %v1715_v29 = vrot.slane %v1694_v26, %v3673_v3  ;;  %v3695_v58 = vrot.slane %v2778_v55, %v3673_v3  ;;  %v3179_v26 = vld [vmem:[#allocation5 + $0x1f8] sm:$0xff]   ;;  %v3185_v63 = vld [vmem:[#allocation5 + $0x208] sm:$0xff]   ;;  %v2577_v55 = vld [vmem:[#allocation8 + $0x28] sm:$0xff] }
 0x359   :  { %v1701_v27 = vrot.slane %v1692_v49, %v3673_v3  ;;  %v1784_v21 = vrot.slane %v2777_v8, %v3673_v3  ;;  %v3177_v49 = vld [vmem:[#allocation5 + $0x270] sm:$0xff]   ;;  %v3186_v31 = vld [vmem:[#allocation5 + $0x288] sm:$0xff]   ;;  %v2575_v8 = vld [vmem:[#allocation8 + $0x18] sm:$0xff] }
 0x35a   :  { %v1725_v6 = vcombine.low %v1715_v29, %v1722_v18  ;;  %v1726_v34 = vcombine.high %v1715_v29, %v1722_v18  ;;  %v3182_v29 = vld [vmem:[#allocation5 + $0x200] sm:$0xff]  }
 0x35b   :  { %v1723_v32 = vcombine.low %v1701_v27, %v1708_v28  ;;  %v1724_v33 = vcombine.high %v1701_v27, %v1708_v28  ;;  %v3180_v27 = vld [vmem:[#allocation5 + $0x278] sm:$0xff]   ;;  %v3181_v28 = vld [vmem:[#allocation5 + $0x240] sm:$0xff]  }
 0x35c   :  { %v1747_v42 = vrot.slane %v1725_v6, %v3673_v3  ;;  %v1754_v43 = vrot.slane %v1726_v34, %v3673_v3  ;;  %v3183_v18 = vld [vmem:[#allocation5 + $0x280] sm:$0xff]   ;;  %v3190_v6 = vld [vmem:[#allocation5 + $0x258] sm:$0xff]  }
 0x35d   :  { %v1733_v37 = vrot.slane %v1723_v32, %v3673_v3  ;;  %v1740_v40 = vrot.slane %v1724_v33, %v3673_v3  ;;  %v3188_v32 = vld [vmem:[#allocation5 + $0x210] sm:$0xff]   ;;  %v3191_v34 = vld [vmem:[#allocation5 + $0x218] sm:$0xff]  }
 0x35e   :  { %v3189_v33 = vld [vmem:[#allocation5 + $0x290] sm:$0xff]  }
 0x35f   :  { %v1755_v17 = vcombine.low %v1733_v37, %v1747_v42  ;;  %v1757_v22 = vcombine.low %v1740_v40, %v1754_v43  ;;  %v1756_v47 = vcombine.high %v1733_v37, %v1747_v42  ;;  %v3192_v37 = vld [vmem:[#allocation5 + $0x298] sm:$0xff]   ;;  %v3193_v40 = vld [vmem:[#allocation5 + $0x260] sm:$0xff]  }
 0x360   :  { %v3194_v43 = vld [vmem:[#allocation5 + $0x220] sm:$0xff]  }
 0x361   :  { %v1764_v48 = vunpack.i.h.s16 %v1755_v17  ;;  %v1766_v51 = vunpack.i.h.s16 %v1757_v22  ;;  %v2774_v52 = vpack.i.b16 %v1755_v17, %v1690_v59 }
 0x363   :  { %v2775_v54 = vpack.i.b16 %v1757_v22, %v1764_v48  ;;  %v2776_v20 = vpack.i.b16 %v1756_v47, %v1766_v51  ;;  %v2573_v47 = vld [vmem:[#allocation8 + $0x8] sm:$0xff]  ;;  %v2574_v48 = vld [vmem:[#allocation8 + $0x10] sm:$0xff] }
 0x364   :  { %v3055_v51 = vpack.c.bf16 %v2574_v48, %v2573_v47 }
 0x365   :  { %v1775_v39 = vcombine.low %v2774_v52, %v2775_v54  ;;  %v1812_v56 = vrot.slane %v2776_v20, %v3673_v3  ;;  %v1776_v4 = vcombine.high %v2774_v52, %v2775_v54  ;;  %v1777_v25 = vcombine.high %v2776_v20, %v2776_v20  ;;  %v2576_v52 = vld [vmem:[#allocation8 + $0x20] sm:$0xff] }
 0x366   :  { %v3285_v54 = vmov 0.0|0.0   ;;  %v3058_v20 = vpack.c.bf16 %v2576_v52, %v2575_v8 }
 0x367   :  { %v1798_v57 = vrot.slane %v1775_v39, %v3673_v3  ;;  %v1824_v38 = vcombine.high %v1812_v56, %v1812_v56  ;;  %v3698_v60 = vrot.slane %v1776_v4, %v3673_v3  ;;  %v3701_v61 = vrot.slane %v1777_v25, %v3673_v3  ;;  %v2578_v39 = vld [vmem:[#allocation8 + $0x30] sm:$0xff]  ;;  %v2579_v4 = vld [vmem:[#allocation8 + $0x38] sm:$0xff]  ;;  %v2580_v25 = vld [vmem:[#allocation8 + $0x40] sm:$0xff] }
 0x368   :  { %v1860_v53 = vrot.slane %v1812_v56, %v3673_v3  ;;  %v3061_v56 = vpack.c.bf16 %v2578_v39, %v2577_v55 }
 0x369   :  { %v1820_v7 = vcombine.low %v1784_v21, %v1798_v57  ;;  %v1821_v10 = vcombine.high %v1784_v21, %v1798_v57  ;;  %v1823_v11 = vcombine.high %v3695_v58, %v3698_v60  ;;  %v1825_v46 = vcombine.high %v3701_v61, %v3701_v61  ;;  %v2582_v57 = vld [vmem:[#allocation8 + $0x50] sm:$0xff] }
 0x36a   :  { %v1874_v14 = vrot.slane %v1824_v38, %v3673_v3  ;;  %v1822_v42 = vcombine.low %v3695_v58, %v3698_v60  ;;  %v1867_v17 = vrot.slane %v3701_v61, %v3673_v3  ;;  %v3064_v21 = vpack.c.bf16 %v2580_v25, %v2579_v4  ;;  %v2583_v58 = vld [vmem:[#allocation8 + $0x58] sm:$0xff]  ;;  %v2584_v60 = vld [vmem:[#allocation8 + $0x60] sm:$0xff] }
 0x36b   :  { %v1846_v12 = vrot.slane %v1821_v10, %v3673_v3  ;;  %v1832_v1 = vrot.slane %v1820_v7, %v3673_v3  ;;  %v1853_v2 = vrot.slane %v1823_v11, %v3673_v3  ;;  %v1881_v15 = vrot.slane %v1825_v46, %v3673_v3  ;;  %v2585_v7 = vld [vmem:[#allocation8 + $0x68] sm:$0xff]  ;;  %v2586_v10 = vld [vmem:[#allocation8 + $0x70] sm:$0xff]  ;;  %v2587_v46 = vld [vmem:[#allocation8 + $0x78] sm:$0xff] }
 0x36c   :  { %v1839_v59 = vrot.slane %v1822_v42, %v3673_v3  ;;  %v3070_v61 = vpack.c.bf16 %v2584_v60, %v2583_v58  ;;  %v3073_v11 = vpack.c.bf16 %v2586_v10, %v2585_v7  ;;  %v2836_v60 = vld [vmem:[#allocation8 + $0x5] ss:$0 sm:$0xff] }
 0x36d   :  { %v1886_v16 = vcombine.low %v1846_v12, %v1874_v14  ;;  %v1887_v36 = vcombine.high %v1846_v12, %v1874_v14  ;;  %v1882_v19 = vcombine.low %v1832_v1, %v1860_v53  ;;  %v1883_v13 = vcombine.high %v1832_v1, %v1860_v53  ;;  %v2588_v12 = vld [vmem:[#allocation8 + $0x80] sm:$0xff] }
 0x36e   :  { %v1888_v23 = vcombine.low %v1853_v2, %v1881_v15  ;;  %v1884_v22 = vcombine.low %v1839_v59, %v1867_v17  ;;  %v1885_v45 = vcombine.high %v1839_v59, %v1867_v17 }
 0x36f   :  { %2264 = vmatprep.mubr.bf16.mxu1 %v1886_v16  ;;  %2305 = vmatprep.mubr.bf16.mxu0 %v1887_v36 }
 0x370   :  { %2265 = vmatmul.mubr.bf16.vlgmr.msra.gmra.mrb[12].mxu1 %v1882_v19  ;;  %2306 = vmatmul.mubr.bf16.vlgmr.msra.gmra.mrb[24].mxu0 %v1883_v13  ;;  %v3076_v13 = vpack.c.bf16 %v2588_v12, %v2587_v46 }
 0x371   :  { %2938 = vmatpush3.bf16.msra.mxu1 %v3173_v41  ;;  %3000 = vmatpush3.bf16.msra.mxu0 %v3174_v9 }
 0x372   :  { %2346 = vmatprep.mubr.bf16.mxu1 %v1888_v23  ;;  %2939 = vmatprep.subr.bf16.mxu1 %v3175_v50 }
 0x373   :  { %3001 = vmatprep.subr.bf16.mxu0 %v3280_v0  ;;  %3015 = vmatprep.mubr.msk.bf16.mxu0 %vm3281_vm0, %v3280_v0 }
 0x375   :  { %2940 = vmatpush3.bf16.msra.mxu1 %v3176_v24  ;;  %3002 = vmatpush3.bf16.msra.mxu0 %v3177_v49 }
 0x376   :  { %2941 = vmatprep.subr.bf16.mxu1 %v3178_v5  ;;  %3003 = vmatprep.subr.bf16.mxu0 %v3280_v0 }
 0x379   :  { %2942 = vmatpush3.bf16.msra.mxu1 %v3179_v26  ;;  %3004 = vmatpush3.bf16.msra.mxu0 %v3180_v27 }
 0x37a   :  { %2943 = vmatprep.subr.bf16.mxu1 %v3181_v28  ;;  %3005 = vmatprep.subr.bf16.mxu0 %v3280_v0 }
 0x37d   :  { %2944 = vmatpush3.bf16.msra.mxu1 %v3182_v29  ;;  %3006 = vmatpush3.bf16.msra.mxu0 %v3183_v18 }
 0x37e   :  { %2945 = vmatprep.subr.bf16.mxu1 %v3184_v30  ;;  %3007 = vmatprep.subr.bf16.mxu0 %v3280_v0 }
 0x381   :  { %2946 = vmatpush3.bf16.msra.mxu1 %v3185_v63  ;;  %3008 = vmatpush3.bf16.msra.mxu0 %v3186_v31 }
 0x382   :  { %2947 = vmatprep.subr.bf16.mxu1 %v3187_v62  ;;  %3009 = vmatprep.subr.bf16.mxu0 %v3280_v0 }
 0x385   :  { %2948 = vmatpush3.bf16.msra.mxu1 %v3188_v32  ;;  %3010 = vmatpush3.bf16.msra.mxu0 %v3189_v33 }
 0x386   :  { %2949 = vmatprep.subr.bf16.mxu1 %v3190_v6  ;;  %3011 = vmatprep.subr.bf16.mxu0 %v3280_v0 }
 0x389   :  { %2950 = vmatpush3.bf16.msra.mxu1 %v3191_v34  ;;  %3012 = vmatpush3.bf16.msra.mxu0 %v3192_v37 }
 0x38a   :  { %2951 = vmatprep.subr.bf16.mxu1 %v3193_v40  ;;  %3013 = vmatprep.subr.bf16.mxu0 %v3280_v0 }
 0x38d   :  { %2952 = vmatpush3.bf16.msra.mxu1 %v3194_v43  ;;  %3014 = vmatpush3.bf16.msra.mxu0 %v3195_v44 }
 0x38e   :  { %3054 = vmatprep.subr.bf16.mxu1 %v3285_v54 }
 0x390   :  { %2347 = vmatmul.mubr.bf16.vlgmr.msra.gmra.mrb[16].mxu1 %v1884_v22  ;;  %3016 = vmatmul.mubr.bf16.vlgmr.msra.gmra.mrb[28].mxu0 %v1885_v45 }
 0x391   :  { %3051 = vmatprep.mubr.msk.f32.mxu1 %vm3281_vm0, %v3280_v0  ;;  %3056 = vmatpush3.bf16.msra.mxu1 %v3055_v51  ;;  %v2581_v0 = vld [vmem:[#allocation8 + $0x48] sm:$0xff] }
 0x392   :  { %3057 = vmatprep.subr.bf16.mxu1 %v3285_v54  ;;  %v3067_v38 = vpack.c.bf16 %v2582_v57, %v2581_v0  ;;  %v2835_v57 = vld [vmem:[#allocation8 + $0x4] ss:$0 sm:$0xff] }
 0x395   :  { %3059 = vmatpush3.bf16.msra.mxu1 %v3058_v20 }
 0x396   :  { %3060 = vmatprep.subr.bf16.mxu1 %v3285_v54 }
 0x399   :  { %3062 = vmatpush3.bf16.msra.mxu1 %v3061_v56 }
 0x39a   :  { %3063 = vmatprep.subr.bf16.mxu1 %v3285_v54 }
 0x39d   :  { %3065 = vmatpush3.bf16.msra.mxu1 %v3064_v21 }
 0x39e   :  { %3066 = vmatprep.subr.bf16.mxu1 %v3285_v54 }
 0x3a1   :  { %3068 = vmatpush3.bf16.msra.mxu1 %v3067_v38 }
 0x3a2   :  { %3069 = vmatprep.subr.bf16.mxu1 %v3285_v54 }
 0x3a5   :  { %3071 = vmatpush3.bf16.msra.mxu1 %v3070_v61 }
 0x3a6   :  { %3072 = vmatprep.subr.bf16.mxu1 %v3285_v54 }
 0x3a9   :  { %3074 = vmatpush3.bf16.msra.mxu1 %v3073_v11 }
 0x3aa   :  { %3075 = vmatprep.subr.bf16.mxu1 %v3285_v54 }
 0x3ad   :  { %3077 = vmatpush3.bf16.msra.mxu1 %v3076_v13 }
 0x443   :  { %v2909_v53 = vpop.f32.mrb[12].mxu1  ;;  %v2931_v14 = vpop.f32.mrb[24].mxu0 }
 0x444   :  { %v2910_v1 = vpop.f32.mrb[13].mxu1  ;;  %v2932_v2 = vpop.f32.mrb[25].mxu0 }
 0x445   :  { %v2911_v15 = vadd.f32 %v2910_v1, %v2909_v53  ;;  %v2933_v16 = vadd.f32 %v2932_v2, %v2931_v14  ;;  %v2912_v36 = vpop.f32.mrb[14].mxu1  ;;  %v2934_v19 = vpop.f32.mrb[26].mxu0 }
 0x446   :  { %v2913_v41 = vpop.f32.mrb[15].mxu1  ;;  %v2935_v9 = vpop.f32.mrb[27].mxu0 }
 0x447   :  { %v2308_v50 = vadd.f32 %v2933_v16, %v2911_v15  ;;  %v2914_v23 = vadd.f32 %v2913_v41, %v2912_v36  ;;  %v2936_v24 = vadd.f32 %v2935_v9, %v2934_v19 }
 0x449   :  { %v2311_v49 = vadd.f32 %v2936_v24, %v2914_v23 }
 0x463   :  { %v2953_v5 = vpop.f32.mrb[16].mxu1  ;;  %v2389_v26 = vpop.f32.mrb[28].mxu0 }
 0x464   :  { %v2954_v27 = vpop.f32.mrb[17].mxu1  ;;  %v3017_v28 = vpop.f32.mrb[29].mxu0 }
 0x465   :  { %v2955_v29 = vadd.f32 %v2954_v27, %v2953_v5  ;;  %v2956_v18 = vpop.f32.mrb[18].mxu1  ;;  %v2392_v30 = vpop.f32.mrb[30].mxu0 }
 0x466   :  { %v2957_v63 = vpop.f32.mrb[19].mxu1  ;;  %v3018_v31 = vpop.f32.mrb[31].mxu0 }
 0x467   :  { %v2349_v62 = vadd.f32 %v2955_v29, %v2308_v50  ;;  %v2958_v32 = vadd.f32 %v2957_v63, %v2956_v18 }
 0x469   :  { %v2390_v33 = vadd.f32 %v2389_v26, %v2349_v62  ;;  %v2352_v6 = vadd.f32 %v2958_v32, %v2311_v49 }
 0x46b   :  { %v2393_v34 = vadd.f32 %v2392_v30, %v2352_v6 }
 0x46d   :  { %v2399_v37 = vsel %vm1447_vm5, %v2393_v34, 0.0 }
 0x46e   :  { %v2400_v40 = vadd.f32 %v2399_v37, %v2390_v33 }
 0x470   :  { %v2401_v42 = vrot.slane %v2400_v40, 4 }
 0x472   :  { %v2402_v43 = vadd.f32 %v2401_v42, %v2400_v40 }
 0x474   :  { %v2403_v44 = vrot.slane %v2402_v43, 2 }
 0x476   :  { %v2404_v59 = vadd.f32 %v2403_v44, %v2402_v43 }
 0x478   :  { %v2405_v17 = vrot.slane %v2404_v59, 1 }
 0x47a   :  { %v2406_v22 = vadd.f32 %v2405_v17, %v2404_v59 }
 0x47c   :  { %v2407_v45 = vmul.f32 0.1, %v2406_v22 }
 0x47e   :  { %v2408_v47 = vsub.f32 %v2390_v33, %v2407_v45  ;;  %v2409_v48 = vsub.f32 %v2393_v34, %v2407_v45 }
 0x480   :  { %v2410_v51 = vmul.f32 %v2408_v47, %v2408_v47  ;;  %v2411_v8 = vmul.f32 %v2409_v48, %v2409_v48 }
 0x482   :  { %v2412_v52 = vsel %vm1447_vm5, %v2411_v8, 0.0  ;;  %v2838_v8 = vld [vmem:[#allocation8 + $0x6] ss:$0 sm:$0xff] }
 0x483   :  { %v2413_v54 = vadd.f32 %v2412_v52, %v2410_v51 }
 0x485   :  { %v2414_v20 = vrot.slane %v2413_v54, 4 }
 0x487   :  { %v2415_v55 = vadd.f32 %v2414_v20, %v2413_v54 }
 0x489   :  { %v2416_v39 = vrot.slane %v2415_v55, 2 }
 0x48b   :  { %v2417_v56 = vadd.f32 %v2416_v39, %v2415_v55 }
 0x48d   :  { %v2418_v4 = vrot.slane %v2417_v56, 1 }
 0x48f   :  { %v2419_v25 = vadd.f32 %v2418_v4, %v2417_v56 }
 0x491   :  { %v2420_v21 = vmul.f32 0.1, %v2419_v25 }
 0x493   :  { %3200 = vrsqrt.f32 %v2420_v21 }
 0x49d   :  { %v3201_v0 = vpop.eup %3200 }
 0x49e   :  { %v2422_v38 = vmul.f32 %v3201_v0, %v2408_v47  ;;  %v2423_v58 = vmul.f32 %v3201_v0, %v2409_v48 }
 0x4a0   :  { %v2428_v61 = vmul.f32 %v2835_v57, %v2422_v38  ;;  %v2429_v7 = vmul.f32 %v2835_v57, %v2423_v58 }
 0x4a2   :  { %v2434_v10 = vadd.f32 %v2836_v60, %v2428_v61  ;;  %v2435_v11 = vadd.f32 %v2836_v60, %v2429_v7 }
 0x4a4   :  { %vm2436_vm0 = vcmp.gt.f32.partialorder %v2434_v10, 0.0  ;;  %vm2437_vm5 = vcmp.gt.f32.partialorder %v2435_v11, 0.0  ;;  %v2438_v46 = vmul.f32 %v2434_v10, %v3404_v35  ;;  %v2439_v12 = vmul.f32 %v2435_v11, %v3404_v35 }
 0x4a6   :  { %v2440_v53 = vsel %vm2436_vm0, %v2434_v10, %v2438_v46  ;;  %v2441_v14 = vsel %vm2437_vm5, %v2435_v11, %v2439_v12 }
 0x4a7   :  { %v2444_v1 = vcombine.high %v2440_v53, %v2440_v53  ;;  %v2451_v2 = vrot.slane %v2440_v53, %v3673_v3  ;;  %v2499_v36 = vrot.slane %v2441_v14, %v3673_v3 }
 0x4a9   :  { %v2458_v15 = vrot.slane %v2444_v1, %v3673_v3  ;;  %v2459_v16 = vcombine.high %v2451_v2, %v2451_v2  ;;  %v2467_v13 = vrot.slane %v2451_v2, %v3673_v3  ;;  %v2506_v49 = vrot.slane %v2499_v36, %v3673_v3 }
 0x4ab   :  { %v2460_v19 = vcombine.high %v2458_v15, %v2458_v15  ;;  %v2474_v41 = vrot.slane %v2458_v15, %v3673_v3  ;;  %v2481_v9 = vrot.slane %v2459_v16, %v3673_v3 }
 0x4ad   :  { %v2488_v50 = vrot.slane %v2460_v19, %v3673_v3  ;;  %v2490_v35 = vcombine.high %v2474_v41, %v2474_v41  ;;  %v2507_v23 = vcombine.low %v2467_v13, %v2481_v9  ;;  %v2837_v24 = vcombine.high %v2467_v13, %v2481_v9 }
 0x4af   :  { %v2492_v5 = vcombine.high %v2488_v50, %v2488_v50  ;;  %v2515_v26 = vrot.slane %v2507_v23, %v3673_v3  ;;  %v2522_v27 = vrot.slane %v2837_v24, %v3673_v3  ;;  %v2531_v28 = vcombine.low %v2488_v50, %v2490_v35 }
 0x4b1   :  { %v2523_v29 = vcombine.low %v2515_v26, %v2522_v27  ;;  %v2532_v18 = vcombine.low %v2492_v5, %v2506_v49  ;;  %v2539_v63 = vrot.slane %v2531_v28, %v3673_v3 }
 0x4b3   :  { %v2530_v30 = vrot.slane %v2523_v29, %v3673_v3  ;;  %v2546_v31 = vrot.slane %v2532_v18, %v3673_v3 }
 0x4b5   :  { %v2547_v62 = vcombine.low %v2539_v63, %v2546_v31  ;;  %v2557_v32 = vsel %vm1263_vm7, %v2530_v30, -inf }
 0x4b6   :  { %v2558_v33 = vrot.slane %v2557_v32, 4 }
 0x4b7   :  { %v2554_v6 = vrot.slane %v2547_v62, %v3673_v3 }
 0x4b8   :  { %v2559_v34 = vmax.f32 %v2557_v32, %v2558_v33 }
 0x4b9   :  { %v2564_v37 = vsel %vm1263_vm7, %v2554_v6, -inf }
 0x4ba   :  { %v2560_v40 = vrot.slane %v2559_v34, 2  ;;  %v2565_v42 = vrot.slane %v2564_v37, 4 }
 0x4bc   :  { %v2561_v43 = vmax.f32 %v2559_v34, %v2560_v40  ;;  %v2566_v44 = vmax.f32 %v2564_v37, %v2565_v42 }
 0x4be   :  { %v2567_v59 = vrot.slane %v2566_v44, 2  ;;  %v2562_v17 = vrot.slane %v2561_v43, 1 }
 0x4c0   :  { %v2568_v22 = vmax.f32 %v2566_v44, %v2567_v59  ;;  %v2563_v47 = vmax.f32 %v2561_v43, %v2562_v17 }
 0x4c2   :  { %v2569_v45 = vrot.slane %v2568_v22, 1 }
 0x4c4   :  { %v2570_v48 = vmax.f32 %v2568_v22, %v2569_v45 }
 0x4c6   :  { %v2597_v51 = vsel %vm2596_vm2, %v2570_v48, %v2563_v47 }
 0x4c7   :  { %3052 = vmatmul.mubr.f32.vlgmr.msra.gmra.mrb[20].mxu1 %v2597_v51 }
 0x59a   :  { %v2665_v3 = vpop.f32.mrb[20].mxu1 }
 0x59b   :  { %v2666_v52 = vadd.f32 %v2838_v8, %v2665_v3  ;;  %v3053_v54 = vpop.f32.mrb[21].mxu1 }
 0x59d   :  { %2669 = vst [vmem:[#allocation10] sm:$0x3] %v2666_v52 }
 0x59e   :  { %3257 = shalt.err (!%p3254_p6)
}
 0x59f   :  { %s3258_s26 = scalar_lea.hbm %s3765_s4, 32 }
 0x5a0   :  { %p3259_p7 = scmp.ne.s32.totalorder %s3765_s4, %s3258_s26  ;;  %p3262_p8 = scmp.lt.u32.totalorder %s3258_s26, %s3765_s4 }
 0x5a2   :  { %p3264_p9 = pnand %p3262_p8, %p3259_p7 }
 0x5a4   :  { %3267 = shalt.err (!%p3264_p9)
}
 0x5a5   :  { %2679 = dma.vmem_to_hbm [thread:$0]  %s2677_s22, 32, %s3765_s4, [#allocation7]  }
 0x5a6   :  { %3272 = dma.done.wait [#allocation7], 32  }
 0x5a7   :  { %3273 = vsyncadd [#allocation7], 4294967264 }
 0x5a8   :  { %2683 = vsyncpa [#allocation6], 1 }
 0x5a9   :  { %2684 = vsyncpa [#allocation9], 1 }
 0x5aa   :  { %2685 = vsyncpa [#allocation7], 1 }

</bundles_post_ra>
